<compile_context>
chip_gen: v6e
topology: v6e:2x2x1
jax: 0.10.0
libtpu: 0.0.40
codegen_flags: <defaults>
</compile_context>

<pallas_src>
import jax
import jax.numpy as jnp
from jax import lax
from jax.experimental import pallas as pl
from jax.experimental.pallas import tpu as pltpu


def _round_up(x, m):
    return ((x + m - 1) // m) * m


# -----------------------------------------------------------------------------
# Pallas kernel
# -----------------------------------------------------------------------------
def _make_basic_block_kernel(Wop, M, Cin, Cout, conv1_in_kernel, has_proj):
    """conv3x3+BN+ReLU -> conv3x3+BN -> (+residual) -> ReLU, fully fused.

    All activations are (C, M) with M = round_up((Ho+2)*(Wo+2), 128): the
    zero-padding ring lives in the lane axis, so each 3x3 tap is a constant
    lane shift of dh*Wop + dw. Outputs at padding / lane-tail positions are
    garbage and are stripped by the wrapper.
    """
    PAD = _round_up(Wop + 1, 128)          # lane extension for the shift slices

    def conv3x3(plane_bf16, w_ref, c_in):
        # plane: (c_in, M) bf16 on the padded grid (zero on the padding ring).
        # w_ref: (9, Cout, c_in) bf16 with the BN scale already folded in.
        zpad = jnp.zeros((c_in, PAD), jnp.bfloat16)
        ext = jnp.concatenate([zpad, plane_bf16, zpad], axis=1)
        acc = None
        t = 0
        for dh in (-1, 0, 1):
            for dw in (-1, 0, 1):
                off = PAD + dh * Wop + dw
                tap = ext[:, off:off + M]                        # (c_in, M) bf16
                part = jnp.dot(w_ref[t], tap,
                               preferred_element_type=jnp.float32)
                acc = part if acc is None else acc + part
                t += 1
        return acc                                               # (Cout, M) f32

    def kernel(*refs):
        if conv1_in_kernel:
            if has_proj:
                (x_ref, mask_ref, w1_ref, b1_ref, w2_ref, b2_ref,
                 wsc_ref, bsc_ref, o_ref) = refs
            else:
                (x_ref, mask_ref, w1_ref, b1_ref, w2_ref, b2_ref, o_ref) = refs
        else:   # stride > 1: wrapper-side im2col; projection always present
            (xcols_ref, res_ref, mask_ref, w1_ref, b1_ref, w2_ref, b2_ref,
             wsc_ref, bsc_ref, o_ref) = refs

        # ---- conv1 + folded BN1 + ReLU --------------------------------------
        if conv1_in_kernel:
            x = x_ref[0]                                         # (Cin, M) bf16
            acc1 = conv3x3(x, w1_ref, Cin)
        else:
            acc1 = jnp.dot(w1_ref[...], xcols_ref[0],
                           preferred_element_type=jnp.float32)   # (Cout, M)
        # one mask multiply zeroes the padding ring (it is conv2's zero pad)
        y1 = jnp.maximum(acc1 + b1_ref[...], 0.0) * mask_ref[...]

        # ---- conv2 + folded BN2 ----------------------------------------------
        acc2 = conv3x3(y1.astype(jnp.bfloat16), w2_ref, Cout)
        y2 = acc2 + b2_ref[...]

        # ---- residual ----------------------------------------------------------
        if has_proj:
            rsrc = x if conv1_in_kernel else res_ref[0]          # (Cin, M) bf16
            r = jnp.dot(wsc_ref[...], rsrc,
                        preferred_element_type=jnp.float32) + bsc_ref[...]
        else:
            r = x.astype(jnp.float32)                            # identity

        o_ref[0] = jnp.maximum(y2 + r, 0.0).astype(o_ref.dtype)

    return kernel


# -----------------------------------------------------------------------------
# Wrapper (NCHW in / NCHW out, like the PyTorch module)
# -----------------------------------------------------------------------------
def basic_block_forward(x_nchw, params, stride):
    x = x_nchw.astype(jnp.float32)
    N, Cin, H, W = x.shape
    Cout = params["w1"].shape[-1]
    has_proj = (stride > 1) or (Cin != Cout)
    conv1_in_kernel = (stride == 1)

    Ho = (H - 1) // stride + 1
    Wo = (W - 1) // stride + 1
    Hop, Wop = Ho + 2, Wo + 2                  # padded output grid
    Mraw = Hop * Wop
    M = _round_up(Mraw, 128)                   # lane-dense flattened spatial

    def to_lanes(a):                           # (N, C, Hop, Wop) -> (N, C, M) bf16
        n, c = a.shape[:2]
        a = a.reshape(n, c, Mraw)
        return jnp.pad(a, ((0, 0), (0, 0), (0, M - Mraw))).astype(jnp.bfloat16)

    # ---- activation inputs (layout plumbing only; FLOPs stay in the kernel) --
    if conv1_in_kernel:
        xpad = jnp.pad(x, ((0, 0), (0, 0), (1, 1), (1, 1)))      # (N,Cin,Hop,Wop)
        act_inputs = [to_lanes(xpad)]
        act_specs = [pl.BlockSpec((1, Cin, M), lambda n: (n, 0, 0))]
    else:
        xpad = jnp.pad(x, ((0, 0), (0, 0), (1, 1), (1, 1)))      # (N,Cin,H+2,W+2)
        taps = []
        for kh in range(3):
            for kw in range(3):
                t = lax.slice(xpad, (0, 0, kh, kw),
                              (N, Cin, kh + stride * (Ho - 1) + 1,
                               kw + stride * (Wo - 1) + 1),
                              (1, 1, stride, stride))             # (N,Cin,Ho,Wo)
                taps.append(t)
        cols = jnp.stack(taps, axis=1)                            # (N,9,Cin,Ho,Wo)
        cols = jnp.pad(cols, ((0, 0), (0, 0), (0, 0), (1, 1), (1, 1)))
        cols = cols.reshape(N, 9 * Cin, Hop, Wop)
        xsub = jnp.pad(x[:, :, ::stride, ::stride],
                       ((0, 0), (0, 0), (1, 1), (1, 1)))          # (N,Cin,Hop,Wop)
        act_inputs = [to_lanes(cols), to_lanes(xsub)]
        act_specs = [pl.BlockSpec((1, 9 * Cin, M), lambda n: (n, 0, 0)),
                     pl.BlockSpec((1, Cin, M), lambda n: (n, 0, 0))]

    # ---- validity mask: 1 on the Ho x Wo interior, 0 on pad ring / lane tail --
    fi = jnp.arange(M, dtype=jnp.int32)
    row, col = fi // Wop, fi % Wop
    valid = (fi < Mraw) & (row >= 1) & (row <= Ho) & (col >= 1) & (col <= Wo)
    mask = valid.astype(jnp.float32).reshape(1, M)

    # ---- weights: fold BN scale in f32, then cast to bf16 ---------------------
    s1 = params["s1"].astype(jnp.float32)
    s2 = params["s2"].astype(jnp.float32)
    b1 = params["b1"].reshape(Cout, 1).astype(jnp.float32)
    b2 = params["b2"].reshape(Cout, 1).astype(jnp.float32)
    if conv1_in_kernel:
        w1k = (params["w1"].reshape(9, Cin, Cout) * s1) \
            .transpose(0, 2, 1).astype(jnp.bfloat16)              # (9,Cout,Cin)
        w1_spec = pl.BlockSpec((9, Cout, Cin), lambda n: (0, 0, 0))
    else:
        w1k = (params["w1"].reshape(9 * Cin, Cout) * s1).T.astype(jnp.bfloat16)
        w1_spec = pl.BlockSpec((Cout, 9 * Cin), lambda n: (0, 0))
    w2k = (params["w2"].reshape(9, Cout, Cout) * s2) \
        .transpose(0, 2, 1).astype(jnp.bfloat16)                  # (9,Cout,Cout)

    inputs = act_inputs + [mask, w1k, b1, w2k, b2]
    in_specs = act_specs + [
        pl.BlockSpec((1, M), lambda n: (0, 0)),
        w1_spec,
        pl.BlockSpec((Cout, 1), lambda n: (0, 0)),
        pl.BlockSpec((9, Cout, Cout), lambda n: (0, 0, 0)),
        pl.BlockSpec((Cout, 1), lambda n: (0, 0)),
    ]
    if has_proj:
        ssc = params["ssc"].astype(jnp.float32)
        wsck = (params["wsc"] * ssc).T.astype(jnp.bfloat16)       # (Cout, Cin)
        bsck = params["bsc"].reshape(Cout, 1).astype(jnp.float32)
        inputs += [wsck, bsck]
        in_specs += [pl.BlockSpec((Cout, Cin), lambda n: (0, 0)),
                     pl.BlockSpec((Cout, 1), lambda n: (0, 0))]

    kernel = _make_basic_block_kernel(Wop, M, Cin, Cout,
                                      conv1_in_kernel, has_proj)

    # explicit scoped-VMEM budget from the real block footprint (review item):
    # defaults (16/32 MiB) are too small at real ResNet sizes; cap < v7x 64 MiB.
    per_block_in = (sum(a.size // a.shape[0] * a.dtype.itemsize for a in act_inputs)
                    + sum(a.size * a.dtype.itemsize
                          for a in inputs[len(act_inputs):]))
    out_block = Cout * M * 4
    interm = ((Cin + Cout) * (M + 2 * _round_up(Wop + 1, 128)) * 2
              + 6 * Cout * M * 4)
    vmem_limit = int(min(max(2 * (per_block_in + out_block) + interm + (4 << 20),
                             32 << 20), 56 << 20))

    out = pl.pallas_call(
        kernel,
        out_shape=jax.ShapeDtypeStruct((N, Cout, M), jnp.float32),
        grid=(N,),
        in_specs=in_specs,
        out_specs=pl.BlockSpec((1, Cout, M), lambda n: (n, 0, 0)),
        compiler_params=pltpu.CompilerParams(
            dimension_semantics=("parallel",),
            vmem_limit_bytes=vmem_limit),
    )(*inputs)

    # strip lane tail + padding ring -> NCHW
    out = out[:, :, :Mraw].reshape(N, Cout, Hop, Wop)[:, :, 1:Ho + 1, 1:Wo + 1]
    return out


# -----------------------------------------------------------------------------
# Deterministic parameter construction (shapes match the PyTorch __init__)
# -----------------------------------------------------------------------------
def init_params(key, Cin, Cout, stride):
    k1, k2, k3 = jax.random.split(key, 3)

    def folded_bn(c, shift):
        i = jnp.arange(c, dtype=jnp.float32)
        gamma = 1.0 + 0.1 * (i + shift) / c
        beta = 0.05 * (i - shift)
        mean = 0.01 * (i + shift)
        var = 1.0 + 0.2 * i / c
        scale = gamma / jnp.sqrt(var + 1e-5)
        bias = beta - mean * scale
        return scale, bias

    p = {
        "w1": 0.1 * jax.random.normal(k1, (3, 3, Cin, Cout), jnp.float32),
        "w2": 0.1 * jax.random.normal(k2, (3, 3, Cout, Cout), jnp.float32),
    }
    p["s1"], p["b1"] = folded_bn(Cout, 0)
    p["s2"], p["b2"] = folded_bn(Cout, 1)
    if stride > 1 or Cin != Cout:
        p["wsc"] = 0.1 * jax.random.normal(k3, (Cin, Cout), jnp.float32)
        p["ssc"], p["bsc"] = folded_bn(Cout, 2)
    return p


# -----------------------------------------------------------------------------
# Pure-JAX reference (validation only; full f32 like the PyTorch module)
# -----------------------------------------------------------------------------
def reference_forward(x_nchw, params, stride):
    dn = ("NHWC", "HWIO", "NHWC")
    x = jnp.transpose(x_nchw, (0, 2, 3, 1)).astype(jnp.float32)
    Cin = x.shape[-1]
    Cout = params["w1"].shape[-1]

    y = lax.conv_general_dilated(x, params["w1"], (stride, stride),
                                 [(1, 1), (1, 1)], dimension_numbers=dn)
    y = jnp.maximum(y * params["s1"] + params["b1"], 0.0)
    y = lax.conv_general_dilated(y, params["w2"], (1, 1),
                                 [(1, 1), (1, 1)], dimension_numbers=dn)
    y = y * params["s2"] + params["b2"]

    if "wsc" in params:
        r = lax.conv_general_dilated(x, params["wsc"].reshape(1, 1, Cin, Cout),
                                     (stride, stride), [(0, 0), (0, 0)],
                                     dimension_numbers=dn)
        r = r * params["ssc"] + params["bsc"]
    else:
        r = x
    out = jnp.maximum(y + r, 0.0)
    return jnp.transpose(out, (0, 3, 1, 2))


# -----------------------------------------------------------------------------
if __name__ == "__main__":
    key = jax.random.PRNGKey(0)
    kx1, kx2, kx3, kp1, kp2, kp3 = jax.random.split(key, 6)

    # Case 1: identity residual (stride 1, Cin == Cout) — in-kernel conv1 taps.
    x1 = jax.random.normal(kx1, (2, 8, 16, 16), jnp.float32)      # NCHW
    p1 = init_params(kp1, Cin=8, Cout=8, stride=1)
    out1 = jax.block_until_ready(basic_block_forward(x1, p1, stride=1))
    ref1 = reference_forward(x1, p1, stride=1)
    assert out1.shape == (2, 8, 16, 16)
    assert jnp.allclose(out1, ref1, atol=5e-2, rtol=5e-2), (
        "case1 mismatch", float(jnp.max(jnp.abs(out1 - ref1))))

    # Case 2: projection residual, stride 2 (wrapper im2col path), 4 -> 8 ch.
    x2 = jax.random.normal(kx2, (2, 4, 16, 16), jnp.float32)      # NCHW
    p2 = init_params(kp2, Cin=4, Cout=8, stride=2)
    out2 = jax.block_until_ready(basic_block_forward(x2, p2, stride=2))
    ref2 = reference_forward(x2, p2, stride=2)
    assert out2.shape == (2, 8, 8, 8)
    assert jnp.allclose(out2, ref2, atol=5e-2, rtol=5e-2), (
        "case2 mismatch", float(jnp.max(jnp.abs(out2 - ref2))))

    # Case 3: stride-1 projection (Cin != Cout), non-square plane, N == 1.
    x3 = jax.random.normal(kx3, (1, 8, 7, 10), jnp.float32)       # NCHW
    p3 = init_params(kp3, Cin=8, Cout=16, stride=1)
    out3 = jax.block_until_ready(basic_block_forward(x3, p3, stride=1))
    ref3 = reference_forward(x3, p3, stride=1)
    assert out3.shape == (1, 16, 7, 10)
    assert jnp.allclose(out3, ref3, atol=5e-2, rtol=5e-2), (
        "case3 mismatch", float(jnp.max(jnp.abs(out3 - ref3))))

    print("KERNEL_OK")
</pallas_src>

<mosaic_0001>
module attributes {stable_mosaic.version = 11 : i64} {
  func.func @kernel(%arg0: i32, %arg1: memref<1x8x384xbf16, #tpu.memory_space<vmem>>, %arg2: memref<1x384xf32, #tpu.memory_space<vmem>>, %arg3: memref<9x8x8xbf16, #tpu.memory_space<vmem>>, %arg4: memref<8x1xf32, #tpu.memory_space<vmem>>, %arg5: memref<9x8x8xbf16, #tpu.memory_space<vmem>>, %arg6: memref<8x1xf32, #tpu.memory_space<vmem>>, %arg7: memref<1x8x384xf32, #tpu.memory_space<vmem>>) attributes {dimension_semantics = [#tpu.dimension_semantics<parallel>], iteration_bounds = array<i64: 2>, scalar_prefetch = 0 : i64, scratch_operands = 0 : i64, tpu.core_type = #tpu.core_type<tc>, window_params = [{transform_indices = @transform_0, window_bounds = array<i64: 1, 8, 384>}, {pipeline_mode = #tpu.pipeline_mode<synchronous>, transform_indices = @transform_1, window_bounds = array<i64: 1, 384>}, {pipeline_mode = #tpu.pipeline_mode<synchronous>, transform_indices = @transform_2, window_bounds = array<i64: 9, 8, 8>}, {pipeline_mode = #tpu.pipeline_mode<synchronous>, transform_indices = @transform_3, window_bounds = array<i64: 8, 1>}, {pipeline_mode = #tpu.pipeline_mode<synchronous>, transform_indices = @transform_4, window_bounds = array<i64: 9, 8, 8>}, {pipeline_mode = #tpu.pipeline_mode<synchronous>, transform_indices = @transform_5, window_bounds = array<i64: 8, 1>}, {transform_indices = @transform_6, window_bounds = array<i64: 1, 8, 384>}]} {
    %c0 = arith.constant 0 : index
    %c0_0 = arith.constant 0 : index
    %c0_1 = arith.constant 0 : index
    %0 = vector.load %arg1[%c0, %c0_0, %c0_1] : memref<1x8x384xbf16, #tpu.memory_space<vmem>>, vector<1x8x384xbf16>
    %1 = vector.shape_cast %0 : vector<1x8x384xbf16> to vector<8x384xbf16>
    %cst = arith.constant 0.000000e+00 : bf16
    %2 = vector.broadcast %cst : bf16 to vector<8x128xbf16>
    %3 = tpu.concatenate %2, %1, %2 in 1 : vector<8x128xbf16>, vector<8x384xbf16>, vector<8x128xbf16> -> vector<8x640xbf16>
    %4 = vector.extract_strided_slice %3 {offsets = [0, 109], sizes = [8, 384], strides = [1, 1]} : vector<8x640xbf16> to vector<8x384xbf16>
    %c0_2 = arith.constant 0 : index
    %c0_3 = arith.constant 0 : index
    %c0_4 = arith.constant 0 : index
    %5 = vector.load %arg3[%c0_2, %c0_3, %c0_4] : memref<9x8x8xbf16, #tpu.memory_space<vmem>>, vector<1x8x8xbf16>
    %6 = vector.shape_cast %5 : vector<1x8x8xbf16> to vector<8x8xbf16>
    %cst_5 = arith.constant dense<0.000000e+00> : vector<8x384xf32>
    %7 = tpu.matmul %6, %4, %cst_5 {dimension_numbers = #tpu.dot_dimension_numbers<[1], [0], [0], [1], [0, 0, 1, 1], [], []>} : vector<8x8xbf16>, vector<8x384xbf16>, vector<8x384xf32> -> vector<8x384xf32>
    %8 = vector.extract_strided_slice %3 {offsets = [0, 110], sizes = [8, 384], strides = [1, 1]} : vector<8x640xbf16> to vector<8x384xbf16>
    %c1 = arith.constant 1 : index
    %c0_6 = arith.constant 0 : index
    %c0_7 = arith.constant 0 : index
    %9 = vector.load %arg3[%c1, %c0_6, %c0_7] : memref<9x8x8xbf16, #tpu.memory_space<vmem>>, vector<1x8x8xbf16>
    %10 = vector.shape_cast %9 : vector<1x8x8xbf16> to vector<8x8xbf16>
    %cst_8 = arith.constant dense<0.000000e+00> : vector<8x384xf32>
    %11 = tpu.matmul %10, %8, %cst_8 {dimension_numbers = #tpu.dot_dimension_numbers<[1], [0], [0], [1], [0, 0, 1, 1], [], []>} : vector<8x8xbf16>, vector<8x384xbf16>, vector<8x384xf32> -> vector<8x384xf32>
    %12 = arith.addf %7, %11 : vector<8x384xf32>
    %13 = vector.extract_strided_slice %3 {offsets = [0, 111], sizes = [8, 384], strides = [1, 1]} : vector<8x640xbf16> to vector<8x384xbf16>
    %c2 = arith.constant 2 : index
    %c0_9 = arith.constant 0 : index
    %c0_10 = arith.constant 0 : index
    %14 = vector.load %arg3[%c2, %c0_9, %c0_10] : memref<9x8x8xbf16, #tpu.memory_space<vmem>>, vector<1x8x8xbf16>
    %15 = vector.shape_cast %14 : vector<1x8x8xbf16> to vector<8x8xbf16>
    %cst_11 = arith.constant dense<0.000000e+00> : vector<8x384xf32>
    %16 = tpu.matmul %15, %13, %cst_11 {dimension_numbers = #tpu.dot_dimension_numbers<[1], [0], [0], [1], [0, 0, 1, 1], [], []>} : vector<8x8xbf16>, vector<8x384xbf16>, vector<8x384xf32> -> vector<8x384xf32>
    %17 = arith.addf %12, %16 : vector<8x384xf32>
    %18 = vector.extract_strided_slice %3 {offsets = [0, 127], sizes = [8, 384], strides = [1, 1]} : vector<8x640xbf16> to vector<8x384xbf16>
    %c3 = arith.constant 3 : index
    %c0_12 = arith.constant 0 : index
    %c0_13 = arith.constant 0 : index
    %19 = vector.load %arg3[%c3, %c0_12, %c0_13] : memref<9x8x8xbf16, #tpu.memory_space<vmem>>, vector<1x8x8xbf16>
    %20 = vector.shape_cast %19 : vector<1x8x8xbf16> to vector<8x8xbf16>
    %cst_14 = arith.constant dense<0.000000e+00> : vector<8x384xf32>
    %21 = tpu.matmul %20, %18, %cst_14 {dimension_numbers = #tpu.dot_dimension_numbers<[1], [0], [0], [1], [0, 0, 1, 1], [], []>} : vector<8x8xbf16>, vector<8x384xbf16>, vector<8x384xf32> -> vector<8x384xf32>
    %22 = arith.addf %17, %21 : vector<8x384xf32>
    %23 = vector.extract_strided_slice %3 {offsets = [0, 128], sizes = [8, 384], strides = [1, 1]} : vector<8x640xbf16> to vector<8x384xbf16>
    %c4 = arith.constant 4 : index
    %c0_15 = arith.constant 0 : index
    %c0_16 = arith.constant 0 : index
    %24 = vector.load %arg3[%c4, %c0_15, %c0_16] : memref<9x8x8xbf16, #tpu.memory_space<vmem>>, vector<1x8x8xbf16>
    %25 = vector.shape_cast %24 : vector<1x8x8xbf16> to vector<8x8xbf16>
    %cst_17 = arith.constant dense<0.000000e+00> : vector<8x384xf32>
    %26 = tpu.matmul %25, %23, %cst_17 {dimension_numbers = #tpu.dot_dimension_numbers<[1], [0], [0], [1], [0, 0, 1, 1], [], []>} : vector<8x8xbf16>, vector<8x384xbf16>, vector<8x384xf32> -> vector<8x384xf32>
    %27 = arith.addf %22, %26 : vector<8x384xf32>
    %28 = vector.extract_strided_slice %3 {offsets = [0, 129], sizes = [8, 384], strides = [1, 1]} : vector<8x640xbf16> to vector<8x384xbf16>
    %c5 = arith.constant 5 : index
    %c0_18 = arith.constant 0 : index
    %c0_19 = arith.constant 0 : index
    %29 = vector.load %arg3[%c5, %c0_18, %c0_19] : memref<9x8x8xbf16, #tpu.memory_space<vmem>>, vector<1x8x8xbf16>
    %30 = vector.shape_cast %29 : vector<1x8x8xbf16> to vector<8x8xbf16>
    %cst_20 = arith.constant dense<0.000000e+00> : vector<8x384xf32>
    %31 = tpu.matmul %30, %28, %cst_20 {dimension_numbers = #tpu.dot_dimension_numbers<[1], [0], [0], [1], [0, 0, 1, 1], [], []>} : vector<8x8xbf16>, vector<8x384xbf16>, vector<8x384xf32> -> vector<8x384xf32>
    %32 = arith.addf %27, %31 : vector<8x384xf32>
    %33 = vector.extract_strided_slice %3 {offsets = [0, 145], sizes = [8, 384], strides = [1, 1]} : vector<8x640xbf16> to vector<8x384xbf16>
    %c6 = arith.constant 6 : index
    %c0_21 = arith.constant 0 : index
    %c0_22 = arith.constant 0 : index
    %34 = vector.load %arg3[%c6, %c0_21, %c0_22] : memref<9x8x8xbf16, #tpu.memory_space<vmem>>, vector<1x8x8xbf16>
    %35 = vector.shape_cast %34 : vector<1x8x8xbf16> to vector<8x8xbf16>
    %cst_23 = arith.constant dense<0.000000e+00> : vector<8x384xf32>
    %36 = tpu.matmul %35, %33, %cst_23 {dimension_numbers = #tpu.dot_dimension_numbers<[1], [0], [0], [1], [0, 0, 1, 1], [], []>} : vector<8x8xbf16>, vector<8x384xbf16>, vector<8x384xf32> -> vector<8x384xf32>
    %37 = arith.addf %32, %36 : vector<8x384xf32>
    %38 = vector.extract_strided_slice %3 {offsets = [0, 146], sizes = [8, 384], strides = [1, 1]} : vector<8x640xbf16> to vector<8x384xbf16>
    %c7 = arith.constant 7 : index
    %c0_24 = arith.constant 0 : index
    %c0_25 = arith.constant 0 : index
    %39 = vector.load %arg3[%c7, %c0_24, %c0_25] : memref<9x8x8xbf16, #tpu.memory_space<vmem>>, vector<1x8x8xbf16>
    %40 = vector.shape_cast %39 : vector<1x8x8xbf16> to vector<8x8xbf16>
    %cst_26 = arith.constant dense<0.000000e+00> : vector<8x384xf32>
    %41 = tpu.matmul %40, %38, %cst_26 {dimension_numbers = #tpu.dot_dimension_numbers<[1], [0], [0], [1], [0, 0, 1, 1], [], []>} : vector<8x8xbf16>, vector<8x384xbf16>, vector<8x384xf32> -> vector<8x384xf32>
    %42 = arith.addf %37, %41 : vector<8x384xf32>
    %43 = vector.extract_strided_slice %3 {offsets = [0, 147], sizes = [8, 384], strides = [1, 1]} : vector<8x640xbf16> to vector<8x384xbf16>
    %c8 = arith.constant 8 : index
    %c0_27 = arith.constant 0 : index
    %c0_28 = arith.constant 0 : index
    %44 = vector.load %arg3[%c8, %c0_27, %c0_28] : memref<9x8x8xbf16, #tpu.memory_space<vmem>>, vector<1x8x8xbf16>
    %45 = vector.shape_cast %44 : vector<1x8x8xbf16> to vector<8x8xbf16>
    %cst_29 = arith.constant dense<0.000000e+00> : vector<8x384xf32>
    %46 = tpu.matmul %45, %43, %cst_29 {dimension_numbers = #tpu.dot_dimension_numbers<[1], [0], [0], [1], [0, 0, 1, 1], [], []>} : vector<8x8xbf16>, vector<8x384xbf16>, vector<8x384xf32> -> vector<8x384xf32>
    %47 = arith.addf %42, %46 : vector<8x384xf32>
    %c0_30 = arith.constant 0 : index
    %c0_31 = arith.constant 0 : index
    %48 = vector.load %arg4[%c0_30, %c0_31] : memref<8x1xf32, #tpu.memory_space<vmem>>, vector<8x1xf32>
    %49 = vector.broadcast %48 : vector<8x1xf32> to vector<8x384xf32>
    %50 = arith.addf %47, %49 : vector<8x384xf32>
    %cst_32 = arith.constant 0.000000e+00 : f32
    %51 = vector.broadcast %cst_32 : f32 to vector<8x384xf32>
    %52 = arith.maximumf %50, %51 : vector<8x384xf32>
    %c0_33 = arith.constant 0 : index
    %c0_34 = arith.constant 0 : index
    %53 = vector.load %arg2[%c0_33, %c0_34] : memref<1x384xf32, #tpu.memory_space<vmem>>, vector<1x384xf32>
    %54 = vector.broadcast %53 : vector<1x384xf32> to vector<8x384xf32>
    %55 = arith.mulf %52, %54 : vector<8x384xf32>
    %56 = arith.truncf %55 : vector<8x384xf32> to vector<8x384xbf16>
    %cst_35 = arith.constant 0.000000e+00 : bf16
    %57 = vector.broadcast %cst_35 : bf16 to vector<8x128xbf16>
    %58 = tpu.concatenate %57, %56, %57 in 1 : vector<8x128xbf16>, vector<8x384xbf16>, vector<8x128xbf16> -> vector<8x640xbf16>
    %59 = vector.extract_strided_slice %58 {offsets = [0, 109], sizes = [8, 384], strides = [1, 1]} : vector<8x640xbf16> to vector<8x384xbf16>
    %c0_36 = arith.constant 0 : index
    %c0_37 = arith.constant 0 : index
    %c0_38 = arith.constant 0 : index
    %60 = vector.load %arg5[%c0_36, %c0_37, %c0_38] : memref<9x8x8xbf16, #tpu.memory_space<vmem>>, vector<1x8x8xbf16>
    %61 = vector.shape_cast %60 : vector<1x8x8xbf16> to vector<8x8xbf16>
    %cst_39 = arith.constant dense<0.000000e+00> : vector<8x384xf32>
    %62 = tpu.matmul %61, %59, %cst_39 {dimension_numbers = #tpu.dot_dimension_numbers<[1], [0], [0], [1], [0, 0, 1, 1], [], []>} : vector<8x8xbf16>, vector<8x384xbf16>, vector<8x384xf32> -> vector<8x384xf32>
    %63 = vector.extract_strided_slice %58 {offsets = [0, 110], sizes = [8, 384], strides = [1, 1]} : vector<8x640xbf16> to vector<8x384xbf16>
    %c1_40 = arith.constant 1 : index
    %c0_41 = arith.constant 0 : index
    %c0_42 = arith.constant 0 : index
    %64 = vector.load %arg5[%c1_40, %c0_41, %c0_42] : memref<9x8x8xbf16, #tpu.memory_space<vmem>>, vector<1x8x8xbf16>
    %65 = vector.shape_cast %64 : vector<1x8x8xbf16> to vector<8x8xbf16>
    %cst_43 = arith.constant dense<0.000000e+00> : vector<8x384xf32>
    %66 = tpu.matmul %65, %63, %cst_43 {dimension_numbers = #tpu.dot_dimension_numbers<[1], [0], [0], [1], [0, 0, 1, 1], [], []>} : vector<8x8xbf16>, vector<8x384xbf16>, vector<8x384xf32> -> vector<8x384xf32>
    %67 = arith.addf %62, %66 : vector<8x384xf32>
    %68 = vector.extract_strided_slice %58 {offsets = [0, 111], sizes = [8, 384], strides = [1, 1]} : vector<8x640xbf16> to vector<8x384xbf16>
    %c2_44 = arith.constant 2 : index
    %c0_45 = arith.constant 0 : index
    %c0_46 = arith.constant 0 : index
    %69 = vector.load %arg5[%c2_44, %c0_45, %c0_46] : memref<9x8x8xbf16, #tpu.memory_space<vmem>>, vector<1x8x8xbf16>
    %70 = vector.shape_cast %69 : vector<1x8x8xbf16> to vector<8x8xbf16>
    %cst_47 = arith.constant dense<0.000000e+00> : vector<8x384xf32>
    %71 = tpu.matmul %70, %68, %cst_47 {dimension_numbers = #tpu.dot_dimension_numbers<[1], [0], [0], [1], [0, 0, 1, 1], [], []>} : vector<8x8xbf16>, vector<8x384xbf16>, vector<8x384xf32> -> vector<8x384xf32>
    %72 = arith.addf %67, %71 : vector<8x384xf32>
    %73 = vector.extract_strided_slice %58 {offsets = [0, 127], sizes = [8, 384], strides = [1, 1]} : vector<8x640xbf16> to vector<8x384xbf16>
    %c3_48 = arith.constant 3 : index
    %c0_49 = arith.constant 0 : index
    %c0_50 = arith.constant 0 : index
    %74 = vector.load %arg5[%c3_48, %c0_49, %c0_50] : memref<9x8x8xbf16, #tpu.memory_space<vmem>>, vector<1x8x8xbf16>
    %75 = vector.shape_cast %74 : vector<1x8x8xbf16> to vector<8x8xbf16>
    %cst_51 = arith.constant dense<0.000000e+00> : vector<8x384xf32>
    %76 = tpu.matmul %75, %73, %cst_51 {dimension_numbers = #tpu.dot_dimension_numbers<[1], [0], [0], [1], [0, 0, 1, 1], [], []>} : vector<8x8xbf16>, vector<8x384xbf16>, vector<8x384xf32> -> vector<8x384xf32>
    %77 = arith.addf %72, %76 : vector<8x384xf32>
    %78 = vector.extract_strided_slice %58 {offsets = [0, 128], sizes = [8, 384], strides = [1, 1]} : vector<8x640xbf16> to vector<8x384xbf16>
    %c4_52 = arith.constant 4 : index
    %c0_53 = arith.constant 0 : index
    %c0_54 = arith.constant 0 : index
    %79 = vector.load %arg5[%c4_52, %c0_53, %c0_54] : memref<9x8x8xbf16, #tpu.memory_space<vmem>>, vector<1x8x8xbf16>
    %80 = vector.shape_cast %79 : vector<1x8x8xbf16> to vector<8x8xbf16>
    %cst_55 = arith.constant dense<0.000000e+00> : vector<8x384xf32>
    %81 = tpu.matmul %80, %78, %cst_55 {dimension_numbers = #tpu.dot_dimension_numbers<[1], [0], [0], [1], [0, 0, 1, 1], [], []>} : vector<8x8xbf16>, vector<8x384xbf16>, vector<8x384xf32> -> vector<8x384xf32>
    %82 = arith.addf %77, %81 : vector<8x384xf32>
    %83 = vector.extract_strided_slice %58 {offsets = [0, 129], sizes = [8, 384], strides = [1, 1]} : vector<8x640xbf16> to vector<8x384xbf16>
    %c5_56 = arith.constant 5 : index
    %c0_57 = arith.constant 0 : index
    %c0_58 = arith.constant 0 : index
    %84 = vector.load %arg5[%c5_56, %c0_57, %c0_58] : memref<9x8x8xbf16, #tpu.memory_space<vmem>>, vector<1x8x8xbf16>
    %85 = vector.shape_cast %84 : vector<1x8x8xbf16> to vector<8x8xbf16>
    %cst_59 = arith.constant dense<0.000000e+00> : vector<8x384xf32>
    %86 = tpu.matmul %85, %83, %cst_59 {dimension_numbers = #tpu.dot_dimension_numbers<[1], [0], [0], [1], [0, 0, 1, 1], [], []>} : vector<8x8xbf16>, vector<8x384xbf16>, vector<8x384xf32> -> vector<8x384xf32>
    %87 = arith.addf %82, %86 : vector<8x384xf32>
    %88 = vector.extract_strided_slice %58 {offsets = [0, 145], sizes = [8, 384], strides = [1, 1]} : vector<8x640xbf16> to vector<8x384xbf16>
    %c6_60 = arith.constant 6 : index
    %c0_61 = arith.constant 0 : index
    %c0_62 = arith.constant 0 : index
    %89 = vector.load %arg5[%c6_60, %c0_61, %c0_62] : memref<9x8x8xbf16, #tpu.memory_space<vmem>>, vector<1x8x8xbf16>
    %90 = vector.shape_cast %89 : vector<1x8x8xbf16> to vector<8x8xbf16>
    %cst_63 = arith.constant dense<0.000000e+00> : vector<8x384xf32>
    %91 = tpu.matmul %90, %88, %cst_63 {dimension_numbers = #tpu.dot_dimension_numbers<[1], [0], [0], [1], [0, 0, 1, 1], [], []>} : vector<8x8xbf16>, vector<8x384xbf16>, vector<8x384xf32> -> vector<8x384xf32>
    %92 = arith.addf %87, %91 : vector<8x384xf32>
    %93 = vector.extract_strided_slice %58 {offsets = [0, 146], sizes = [8, 384], strides = [1, 1]} : vector<8x640xbf16> to vector<8x384xbf16>
    %c7_64 = arith.constant 7 : index
    %c0_65 = arith.constant 0 : index
    %c0_66 = arith.constant 0 : index
    %94 = vector.load %arg5[%c7_64, %c0_65, %c0_66] : memref<9x8x8xbf16, #tpu.memory_space<vmem>>, vector<1x8x8xbf16>
    %95 = vector.shape_cast %94 : vector<1x8x8xbf16> to vector<8x8xbf16>
    %cst_67 = arith.constant dense<0.000000e+00> : vector<8x384xf32>
    %96 = tpu.matmul %95, %93, %cst_67 {dimension_numbers = #tpu.dot_dimension_numbers<[1], [0], [0], [1], [0, 0, 1, 1], [], []>} : vector<8x8xbf16>, vector<8x384xbf16>, vector<8x384xf32> -> vector<8x384xf32>
    %97 = arith.addf %92, %96 : vector<8x384xf32>
    %98 = vector.extract_strided_slice %58 {offsets = [0, 147], sizes = [8, 384], strides = [1, 1]} : vector<8x640xbf16> to vector<8x384xbf16>
    %c8_68 = arith.constant 8 : index
    %c0_69 = arith.constant 0 : index
    %c0_70 = arith.constant 0 : index
    %99 = vector.load %arg5[%c8_68, %c0_69, %c0_70] : memref<9x8x8xbf16, #tpu.memory_space<vmem>>, vector<1x8x8xbf16>
    %100 = vector.shape_cast %99 : vector<1x8x8xbf16> to vector<8x8xbf16>
    %cst_71 = arith.constant dense<0.000000e+00> : vector<8x384xf32>
    %101 = tpu.matmul %100, %98, %cst_71 {dimension_numbers = #tpu.dot_dimension_numbers<[1], [0], [0], [1], [0, 0, 1, 1], [], []>} : vector<8x8xbf16>, vector<8x384xbf16>, vector<8x384xf32> -> vector<8x384xf32>
    %102 = arith.addf %97, %101 : vector<8x384xf32>
    %c0_72 = arith.constant 0 : index
    %c0_73 = arith.constant 0 : index
    %103 = vector.load %arg6[%c0_72, %c0_73] : memref<8x1xf32, #tpu.memory_space<vmem>>, vector<8x1xf32>
    %104 = vector.broadcast %103 : vector<8x1xf32> to vector<8x384xf32>
    %105 = arith.addf %102, %104 : vector<8x384xf32>
    %106 = arith.extf %1 : vector<8x384xbf16> to vector<8x384xf32>
    %107 = arith.addf %105, %106 : vector<8x384xf32>
    %cst_74 = arith.constant 0.000000e+00 : f32
    %108 = vector.broadcast %cst_74 : f32 to vector<8x384xf32>
    %109 = arith.maximumf %107, %108 : vector<8x384xf32>
    %c0_75 = arith.constant 0 : index
    %c0_76 = arith.constant 0 : index
    %c0_77 = arith.constant 0 : index
    %110 = vector.load %arg7[%c0_75, %c0_76, %c0_77] : memref<1x8x384xf32, #tpu.memory_space<vmem>>, vector<1x8x384xf32>
    %111 = vector.shape_cast %110 : vector<1x8x384xf32> to vector<8x384xf32>
    %112 = vector.shape_cast %109 : vector<8x384xf32> to vector<1x8x384xf32>
    tpu.vector_store %arg7[%c0_75, %c0_76, %c0_77], %112 {strides = array<i32>} : memref<1x8x384xf32, #tpu.memory_space<vmem>>, vector<1x8x384xf32>,
    return
  }
  func.func @transform_0(%arg0: i32) -> (i32, i32, i32) {
    %c0_i32 = arith.constant 0 : i32
    %c0_i32_0 = arith.constant 0 : i32
    %c0_i32_1 = arith.constant 0 : i32
    return %arg0, %c0_i32, %c0_i32_0 : i32, i32, i32
  }
  func.func @transform_1(%arg0: i32) -> (i32, i32) {
    %c0_i32 = arith.constant 0 : i32
    %c0_i32_0 = arith.constant 0 : i32
    %c0_i32_1 = arith.constant 0 : i32
    return %c0_i32, %c0_i32_0 : i32, i32
  }
  func.func @transform_2(%arg0: i32) -> (i32, i32, i32) {
    %c0_i32 = arith.constant 0 : i32
    %c0_i32_0 = arith.constant 0 : i32
    %c0_i32_1 = arith.constant 0 : i32
    %c0_i32_2 = arith.constant 0 : i32
    return %c0_i32, %c0_i32_0, %c0_i32_1 : i32, i32, i32
  }
  func.func @transform_3(%arg0: i32) -> (i32, i32) {
    %c0_i32 = arith.constant 0 : i32
    %c0_i32_0 = arith.constant 0 : i32
    %c0_i32_1 = arith.constant 0 : i32
    return %c0_i32, %c0_i32_0 : i32, i32
  }
  func.func @transform_4(%arg0: i32) -> (i32, i32, i32) {
    %c0_i32 = arith.constant 0 : i32
    %c0_i32_0 = arith.constant 0 : i32
    %c0_i32_1 = arith.constant 0 : i32
    %c0_i32_2 = arith.constant 0 : i32
    return %c0_i32, %c0_i32_0, %c0_i32_1 : i32, i32, i32
  }
  func.func @transform_5(%arg0: i32) -> (i32, i32) {
    %c0_i32 = arith.constant 0 : i32
    %c0_i32_0 = arith.constant 0 : i32
    %c0_i32_1 = arith.constant 0 : i32
    return %c0_i32, %c0_i32_0 : i32, i32
  }
  func.func @transform_6(%arg0: i32) -> (i32, i32, i32) {
    %c0_i32 = arith.constant 0 : i32
    %c0_i32_0 = arith.constant 0 : i32
    %c0_i32_1 = arith.constant 0 : i32
    return %arg0, %c0_i32, %c0_i32_0 : i32, i32, i32
  }
}

</mosaic_0001>

<bundles_post_ra>
// kernel: tpu_custom_call.1
= control target key start
LH: loop header
LB: loop body
LE: loop exit
PB: predicated region body
PF: predicated region fallthrough
CT: control target
= control target key end

     0   :  { %11 = vsyncpa [#allocation3], 0  ;;  %s3241_s0 = inlined_call_operand.vmem [shape: bf16[2,8,384], index: 0, kind: input, shape index: {}]   ;;  %s3242_s1 = inlined_call_operand.vmem [shape: f32[1,384], index: 1, kind: input, shape index: {}]   ;;  %s3243_s2 = inlined_call_operand.vmem [shape: bf16[9,8,8], index: 2, kind: input, shape index: {}]   ;;  %s3244_s3 = inlined_call_operand.vmem [shape: f32[8,1], index: 3, kind: input, shape index: {}]   ;;  %s3245_s4 = inlined_call_operand.vmem [shape: bf16[9,8,8], index: 4, kind: input, shape index: {}]   ;;  %s3246_s5 = inlined_call_operand.vmem [shape: f32[8,1], index: 5, kind: input, shape index: {}]   ;;  %s3247_s6 = inlined_call_operand.hbm [shape: f32[2,8,384], index: 6, kind: output, shape index: {}]  }
   0x1   :  { %13 = vsyncpa [#allocation3 + $0x1], 0  ;;  %s2708_s21 = smov 0   ;;  %s2710_s22 = smov 0  }
   0x2   :  { %s2712_s23 = smov 0   ;;  %s2714_s24 = smov 0  }
   0x3 LB: > { %s2729_s25 = sadd.s32 4294967295, %s2659_s24   ;;  %s2315_s26 = sadd.s32 4294967294, %s2659_s24   ;;  %s2659_s24 = sphi %s2714_s24, %s3253_s24   ;;  %s2655_s23 = sphi %s2712_s23, %s3252_s23   ;;  %s2651_s22 = sphi %s2710_s22, %s3251_s22   ;;  %s2647_s21 = sphi %s2708_s21, %s3250_s21  }
   0x4   : > { %s2733_s27 = sadd.s32 1, %s2659_s24   ;;  %s157_s28 = sadd.s32 1, %s2655_s23 }
   0x5   : > { %s154_s29 = ssub.s32 %s2659_s24, %s2733_s27  ;;  %p167_p0 = scmp.ne.s32.totalorder %s2655_s23, %s2651_s22 }
   0x6   : > { %p155_p1 = scmp.eq.s32.totalorder %s154_s29, 0  ;;  %p168_p2 = scmp.eq.s32.totalorder %s2729_s25, 1 }
   0x7   : > { %p173_p3 = scmp.ne.s32.totalorder %s2651_s22, %s2647_s21  ;;  %p174_p4 = scmp.eq.s32.totalorder %s2315_s26, 1 }
   0x8   : > { %s2744_s30 = scalar_select %p155_p1, %s2655_s23, %s157_s28  }
   0x9   : > { %p2746_p5 = por %p168_p2, %p167_p0  ;;  %p2750_p6 = por %p174_p4, %p173_p3 }
   0xa   : > { %p2318_p7 = scmp.ge.s32.totalorder %s2659_s24, 1  ;;  %p215_p8 = scmp.lt.s32.totalorder %s2659_s24, 3 }
   0xc   : > { %p216_p9 = pnand %p2318_p7, %p215_p8 }
   0xd   : > { %p245_p10 = scmp.lt.s32.totalorder (!%p216_p9), %s2729_s25, 1  ;;  %s2662_s9 = smov (!%p216_p9), 18  }
   0xe   : > { %219 = sbr.rel (%p216_p9) target bundleno = 818 (0x332), region = 44  ;;  %s2665_s15 = smov (!%p216_p9), 19  }
   0xf   : > { %s2666_s16 = smov (!%p216_p9), 17   ;;  %s2667_s17 = smov (!%p216_p9), 1  }
  0x10   : > { %s2668_s18 = smov (!%p216_p9), 127   ;;  %s2669_s19 = smov (!%p216_p9), 111  }
  0x11   : > { %s2670_s20 = smov (!%p216_p9), 110   ;;  %s2671_s26 = smov (!%p216_p9), 109  }
  0x12   : > { %s2542_s12 = smul.u32 (!%p216_p9), 384, %s2729_s25 }
  0x13   : > { %v2661_v0 = vmov 0   ;;  %s246_s10 = scalar_select %p245_p10, %s2729_s25, 1  ;;  %v2663_v1 = vmov 0.0   ;;  %vm2664_vm0 = vmmov 0   ;;  %v1235_v7 = vld [vmem:[%s3244_s3] sm:$0xff]  ;;  %vm273_vm1 = vcmask 146432  }
  0x14   : > { %265 = vrot.lane.b32.xlu0 %v2661_v0, %s2662_s9  ;;  %323 = vmatprep.mubr.bf16.mxu0 %v2661_v0  ;;  %vm281_vm2 = vcmask 1043456   ;;  %v2323_v14 = vld [vmem:[%s3243_s2 + $0x4] sm:$0xf]  ;;  %vm277_vm3 = vcmask 64512   ;;  %vm380_vm4 = vcmask 154624   ;;  %vm487_vm5 = vcmask 138240  }
  0x15   : > { %2432 = vmatprep.subr.bf16.mxu1 %v2663_v1  ;;  %2593 = vset.pattern.permute.xlu0 %v2661_v0  ;;  %s2541_s11 = smul.u32 12, %s246_s10  ;;  %v261_v24 = vld [vmem:[%s3243_s2] sm:$0xf]  ;;  %v2330_v34 = vld [vmem:[%s3243_s2 + $0x8] sm:$0xf]  ;;  %vm597_vm6 = vcmask 7168   ;;  %s2254_s10 = scalar_lea.hbm %s3247_s6, %s2542_s12 }
  0x16   : > { %2434 = vmatprep.mubr.msk.bf16.mxu1 %vm2664_vm0, %v2663_v1  ;;  %v2334_v44 = vld [vmem:[%s3243_s2 + $0xc] sm:$0xf]  ;;  %vm805_vm7 = vcmask 1039360   ;;  %v2338_v55 = vld [vmem:[%s3243_s2 + $0x10] sm:$0xf]  ;;  %vm915_vm8 = vcmask 908288  }
  0x17   : > { %s2768_s14 = scalar_lea.vmem %s3241_s0, %s2541_s11  ;;  %vm1025_vm9 = vcmask 900096   ;;  %vm1135_vm10 = vcmask 891904  }
  0x18   : > { %v251_v2 = vld [vmem:[%s2768_s14] sm:$0xff]  ;;  %v252_v3 = vld [vmem:[%s2768_s14 + $0x8] sm:$0xf] }
  0x19   : > { %v2772_v4 = vcombine.high %v251_v2, %v251_v2  ;;  %v2774_v5 = vcombine.low %v251_v2, %v251_v2  ;;  %v2780_v6 = vcombine.low %v252_v3, %v252_v3  ;;  %v2342_v3 = vld [vmem:[%s3243_s2 + $0x14] sm:$0xf] }
  0x1b   : > { %269 = vrot.lane.b32.xlu1 %v2772_v4, %s2662_s9  ;;  %267 = vrot.lane.b32.xlu0 %v2774_v5, %s2662_s9  ;;  %v703_v47 = vsel %vm281_vm2, %v2774_v5, 0  ;;  %v709_v52 = vsel %vm281_vm2, %v2780_v6, 0 }
  0x1f   : > { %271 = vrot.lane.b32.xlu1 %v2780_v6, %s2662_s9  ;;  %372 = vrot.lane.b32.xlu0 %v2661_v0, %s2665_s15 }
  0x23   : > { %374 = vrot.lane.b32.xlu1 %v2774_v5, %s2665_s15  ;;  %376 = vrot.lane.b32.xlu0 %v2772_v4, %s2665_s15 }
  0x27   : > { %378 = vrot.lane.b32.xlu1 %v2780_v6, %s2665_s15  ;;  %479 = vrot.lane.b32.xlu0 %v2661_v0, %s2666_s16 }
  0x2b   : > { %481 = vrot.lane.b32.xlu1 %v2774_v5, %s2666_s16  ;;  %483 = vrot.lane.b32.xlu0 %v2772_v4, %s2666_s16 }
  0x2f   : > { %485 = vrot.lane.b32.xlu1 %v2780_v6, %s2666_s16  ;;  %589 = vrot.lane.b32.xlu0 %v2661_v0, %s2667_s17 }
  0x33   : > { %591 = vrot.lane.b32.xlu1 %v2774_v5, %s2667_s17  ;;  %593 = vrot.lane.b32.xlu0 %v2772_v4, %s2667_s17 }
  0x37   : > { %595 = vrot.lane.b32.xlu1 %v2780_v6, %s2667_s17  ;;  %797 = vrot.lane.b32.xlu0 %v2774_v5, %s2668_s18 }
  0x3b   : > { %799 = vrot.lane.b32.xlu1 %v2772_v4, %s2668_s18  ;;  %801 = vrot.lane.b32.xlu0 %v2780_v6, %s2668_s18 }
  0x3f   : > { %803 = vrot.lane.b32.xlu1 %v2661_v0, %s2668_s18  ;;  %907 = vrot.lane.b32.xlu0 %v2774_v5, %s2669_s19 }
  0x43   : > { %909 = vrot.lane.b32.xlu1 %v2772_v4, %s2669_s19  ;;  %911 = vrot.lane.b32.xlu0 %v2780_v6, %s2669_s19 }
  0x47   : > { %913 = vrot.lane.b32.xlu1 %v2661_v0, %s2669_s19  ;;  %1017 = vrot.lane.b32.xlu0 %v2774_v5, %s2670_s20 }
  0x4b   : > { %1019 = vrot.lane.b32.xlu1 %v2772_v4, %s2670_s20  ;;  %1021 = vrot.lane.b32.xlu0 %v2780_v6, %s2670_s20 }
  0x4f   : > { %1023 = vrot.lane.b32.xlu1 %v2661_v0, %s2670_s20  ;;  %1127 = vrot.lane.b32.xlu0 %v2774_v5, %s2671_s26 }
  0x53   : > { %1129 = vrot.lane.b32.xlu1 %v2772_v4, %s2671_s26  ;;  %1131 = vrot.lane.b32.xlu0 %v2780_v6, %s2671_s26 }
  0x57   : > { %1133 = vrot.lane.b32.xlu1 %v2661_v0, %s2671_s26  ;;  %1238 = vperm.xlu0 %2593, %v1235_v7  }
  0x86   : > { %v2843_v8 = vpop.permute.xlu0 %265 }
  0x8d   : > { %v270_v9 = vpop.permute.xlu1 %269  ;;  %v268_v10 = vpop.permute.xlu0 %267 }
  0x8e   : > { %v275_v11 = vsel %vm273_vm1, %v268_v10, %v270_v9  ;;  %v274_v12 = vsel %vm273_vm1, %v2843_v8, %v268_v10 }
  0x8f   : > { %2324 = vmatprep.subr.msk.bf16.mxu0 %vm281_vm2, %v275_v11  ;;  %v283_v13 = vsel %vm281_vm2, %v274_v12, 0 }
  0x90   : > { %306 = vmatpush1.bf16.msra.mxu0 %v283_v13 }
  0x91   : > { %v272_v15 = vpop.permute.xlu1 %271  ;;  %v2853_v16 = vpop.permute.xlu0 %372 }
  0x92   : > { %v276_v17 = vsel %vm273_vm1, %v270_v9, %v272_v15 }
  0x93   : > { %2325 = vmatmul.mubr.msk.bf16.vlgmr.msra.gmra.mxu0 %vm277_vm3, %v2323_v14  ;;  %v289_v18 = vsel %vm281_vm2, %v276_v17, 0 }
  0x94   : > { %2433 = vmatpush3.bf16.msra.mxu1 %v289_v18  ;;  %428 = vmatprep.mubr.bf16.mxu0 %v2661_v0 }
  0x95   : > { %v375_v19 = vpop.permute.xlu1 %374  ;;  %v377_v20 = vpop.permute.xlu0 %376  ;;  %2438 = vmatprep.subr.bf16.mxu1 %v2663_v1 }
  0x96   : > { %v381_v21 = vsel %vm380_vm4, %v2853_v16, %v375_v19  ;;  %v382_v22 = vsel %vm380_vm4, %v375_v19, %v377_v20 }
  0x97   : > { %v388_v23 = vsel %vm281_vm2, %v381_v21, 0  ;;  %2435 = vmatmul.mubr.msk.bf16.vlgmr.msra.gmra.mxu1 %vm277_vm3, %v2323_v14  ;;  %2327 = vmatprep.subr.msk.bf16.mxu0 %vm281_vm2, %v382_v22  ;;  %v2346_v14 = vld [vmem:[%s3243_s2 + $0x18] sm:$0xf] }
  0x98   : > { %411 = vmatpush1.bf16.msra.mxu0 %v388_v23  ;;  %2440 = vmatprep.mubr.msk.bf16.mxu1 %vm2664_vm0, %v2663_v1 }
  0x99   : > { %v379_v25 = vpop.permute.xlu1 %378  ;;  %v2871_v26 = vpop.permute.xlu0 %479 }
  0x9a   : > { %v383_v27 = vsel %vm380_vm4, %v377_v20, %v379_v25  ;;  %v2350_v25 = vld [vmem:[%s3243_s2 + $0x1c] sm:$0xf] }
  0x9b   : > { %v394_v28 = vsel %vm281_vm2, %v383_v27, 0  ;;  %2328 = vmatmul.mubr.msk.bf16.vlgmr.msra.gmra.mxu0 %vm277_vm3, %v261_v24 }
  0x9c   : > { %2439 = vmatpush3.bf16.msra.mxu1 %v394_v28  ;;  %535 = vmatprep.mubr.bf16.mxu0 %v2661_v0 }
  0x9d   : > { %v482_v29 = vpop.permute.xlu1 %481  ;;  %v484_v30 = vpop.permute.xlu0 %483  ;;  %2444 = vmatprep.subr.bf16.mxu1 %v2663_v1 }
  0x9e   : > { %v488_v31 = vsel %vm487_vm5, %v2871_v26, %v482_v29  ;;  %v489_v32 = vsel %vm487_vm5, %v482_v29, %v484_v30 }
  0x9f   : > { %v495_v33 = vsel %vm281_vm2, %v488_v31, 0  ;;  %2441 = vmatmul.mubr.msk.bf16.vlgmr.msra.gmra.mxu1 %vm277_vm3, %v261_v24  ;;  %2331 = vmatprep.subr.msk.bf16.mxu0 %vm281_vm2, %v489_v32  ;;  %v2354_v31 = vld [vmem:[%s3243_s2 + $0x20] sm:$0xf] }
  0xa0   : > { %518 = vmatpush1.bf16.msra.mxu0 %v495_v33  ;;  %2446 = vmatprep.mubr.msk.bf16.mxu1 %vm2664_vm0, %v2663_v1 }
  0xa1   : > { %v486_v35 = vpop.permute.xlu1 %485  ;;  %v2889_v36 = vpop.permute.xlu0 %589 }
  0xa2   : > { %v490_v37 = vsel %vm487_vm5, %v484_v30, %v486_v35 }
  0xa3   : > { %v501_v38 = vsel %vm281_vm2, %v490_v37, 0  ;;  %2332 = vmatmul.mubr.msk.bf16.vlgmr.msra.gmra.mxu0 %vm277_vm3, %v2330_v34 }
  0xa4   : > { %2445 = vmatpush3.bf16.msra.mxu1 %v501_v38  ;;  %645 = vmatprep.mubr.bf16.mxu0 %v2661_v0 }
  0xa5   : > { %v592_v39 = vpop.permute.xlu1 %591  ;;  %v594_v40 = vpop.permute.xlu0 %593  ;;  %2450 = vmatprep.subr.bf16.mxu1 %v2663_v1 }
  0xa6   : > { %v598_v41 = vsel %vm597_vm6, %v2889_v36, %v592_v39  ;;  %v599_v42 = vsel %vm597_vm6, %v592_v39, %v594_v40 }
  0xa7   : > { %v605_v43 = vsel %vm281_vm2, %v598_v41, 0  ;;  %2447 = vmatmul.mubr.msk.bf16.vlgmr.msra.gmra.mxu1 %vm277_vm3, %v2330_v34  ;;  %2335 = vmatprep.subr.msk.bf16.mxu0 %vm281_vm2, %v599_v42 }
  0xa8   : > { %628 = vmatpush1.bf16.msra.mxu0 %v605_v43  ;;  %2452 = vmatprep.mubr.msk.bf16.mxu1 %vm2664_vm0, %v2663_v1 }
  0xa9   : > { %v596_v45 = vpop.permute.xlu1 %595  ;;  %v798_v46 = vpop.permute.xlu0 %797  ;;  %2339 = vmatprep.subr.msk.bf16.mxu0 %vm281_vm2, %v2772_v4 }
  0xaa   : > { %v600_v48 = vsel %vm597_vm6, %v594_v40, %v596_v45 }
  0xab   : > { %v611_v49 = vsel %vm281_vm2, %v600_v48, 0  ;;  %2336 = vmatmul.mubr.msk.bf16.vlgmr.msra.gmra.mxu0 %vm277_vm3, %v2334_v44 }
  0xac   : > { %2451 = vmatpush3.bf16.msra.mxu1 %v611_v49  ;;  %726 = vmatpush1.bf16.msra.mxu0 %v703_v47 }
  0xad   : > { %v800_v50 = vpop.permute.xlu1 %799  ;;  %v802_v51 = vpop.permute.xlu0 %801  ;;  %743 = vmatprep.mubr.bf16.mxu0 %v2661_v0  ;;  %2456 = vmatprep.subr.bf16.mxu1 %v2663_v1 }
  0xae   : > { %v806_v53 = vsel %vm805_vm7, %v798_v46, %v800_v50  ;;  %v807_v54 = vsel %vm805_vm7, %v800_v50, %v802_v51 }
  0xaf   : > { %2453 = vmatmul.mubr.msk.bf16.vlgmr.msra.gmra.mxu1 %vm277_vm3, %v2334_v44  ;;  %2343 = vmatprep.subr.msk.bf16.mxu0 %vm281_vm2, %v807_v54  ;;  %v813_v56 = vsel %vm281_vm2, %v806_v53, 0 }
  0xb0   : > { %2457 = vmatpush3.bf16.msra.mxu1 %v709_v52  ;;  %2458 = vmatprep.mubr.msk.bf16.mxu1 %vm2664_vm0, %v2663_v1 }
  0xb1   : > { %v2928_v57 = vpop.permute.xlu1 %803  ;;  %v908_v58 = vpop.permute.xlu0 %907  ;;  %2462 = vmatprep.subr.bf16.mxu1 %v2663_v1 }
  0xb2   : > { %v808_v59 = vsel %vm805_vm7, %v802_v51, %v2928_v57 }
  0xb3   : > { %2340 = vmatmul.mubr.msk.bf16.vlgmr.msra.gmra.mxu0 %vm277_vm3, %v2338_v55  ;;  %v819_v60 = vsel %vm281_vm2, %v808_v59, 0 }
  0xb4   : > { %836 = vmatpush1.bf16.msra.mxu0 %v813_v56  ;;  %853 = vmatprep.mubr.bf16.mxu0 %v2661_v0 }
  0xb5   : > { %v910_v61 = vpop.permute.xlu1 %909  ;;  %v912_v62 = vpop.permute.xlu0 %911 }
  0xb6   : > { %v916_v63 = vsel %vm915_vm8, %v908_v58, %v910_v61  ;;  %v917_v2 = vsel %vm915_vm8, %v910_v61, %v912_v62 }
  0xb7   : > { %2459 = vmatmul.mubr.msk.bf16.vlgmr.msra.gmra.mxu1 %vm277_vm3, %v2338_v55  ;;  %2347 = vmatprep.subr.msk.bf16.mxu0 %vm281_vm2, %v917_v2  ;;  %v923_v4 = vsel %vm281_vm2, %v916_v63, 0 }
  0xb8   : > { %2463 = vmatpush3.bf16.msra.mxu1 %v819_v60  ;;  %2464 = vmatprep.mubr.msk.bf16.mxu1 %vm2664_vm0, %v2663_v1 }
  0xb9   : > { %v2946_v5 = vpop.permute.xlu1 %913  ;;  %v1018_v6 = vpop.permute.xlu0 %1017  ;;  %2468 = vmatprep.subr.bf16.mxu1 %v2663_v1 }
  0xba   : > { %v918_v7 = vsel %vm915_vm8, %v912_v62, %v2946_v5 }
  0xbb   : > { %2344 = vmatmul.mubr.msk.bf16.vlgmr.msra.gmra.mxu0 %vm277_vm3, %v2342_v3  ;;  %v929_v9 = vsel %vm281_vm2, %v918_v7, 0 }
  0xbc   : > { %946 = vmatpush1.bf16.msra.mxu0 %v923_v4  ;;  %963 = vmatprep.mubr.bf16.mxu0 %v2661_v0 }
  0xbd   : > { %v1020_v10 = vpop.permute.xlu1 %1019  ;;  %v1022_v11 = vpop.permute.xlu0 %1021 }
  0xbe   : > { %v1026_v12 = vsel %vm1025_vm9, %v1018_v6, %v1020_v10  ;;  %v1027_v13 = vsel %vm1025_vm9, %v1020_v10, %v1022_v11 }
  0xbf   : > { %2465 = vmatmul.mubr.msk.bf16.vlgmr.msra.gmra.mxu1 %vm277_vm3, %v2342_v3  ;;  %2351 = vmatprep.subr.msk.bf16.mxu0 %vm281_vm2, %v1027_v13  ;;  %v1033_v15 = vsel %vm281_vm2, %v1026_v12, 0 }
  0xc0   : > { %2469 = vmatpush3.bf16.msra.mxu1 %v929_v9  ;;  %2470 = vmatprep.mubr.msk.bf16.mxu1 %vm2664_vm0, %v2663_v1 }
  0xc1   : > { %v2964_v17 = vpop.permute.xlu1 %1023  ;;  %v1128_v18 = vpop.permute.xlu0 %1127  ;;  %2474 = vmatprep.subr.bf16.mxu1 %v2663_v1 }
  0xc2   : > { %v1028_v19 = vsel %vm1025_vm9, %v1022_v11, %v2964_v17 }
  0xc3   : > { %2348 = vmatmul.mubr.msk.bf16.vlgmr.msra.gmra.mxu0 %vm277_vm3, %v2346_v14  ;;  %v1039_v20 = vsel %vm281_vm2, %v1028_v19, 0 }
  0xc4   : > { %1056 = vmatpush1.bf16.msra.mxu0 %v1033_v15  ;;  %1073 = vmatprep.mubr.bf16.mxu0 %v2661_v0 }
  0xc5   : > { %v1130_v21 = vpop.permute.xlu1 %1129  ;;  %v1132_v22 = vpop.permute.xlu0 %1131 }
  0xc6   : > { %v1136_v23 = vsel %vm1135_vm10, %v1128_v18, %v1130_v21  ;;  %v1137_v24 = vsel %vm1135_vm10, %v1130_v21, %v1132_v22 }
  0xc7   : > { %2471 = vmatmul.mubr.msk.bf16.vlgmr.msra.gmra.mxu1 %vm277_vm3, %v2346_v14  ;;  %2355 = vmatprep.subr.msk.bf16.mxu0 %vm281_vm2, %v1137_v24  ;;  %v1143_v27 = vsel %vm281_vm2, %v1136_v23, 0 }
  0xc8   : > { %2475 = vmatpush3.bf16.msra.mxu1 %v1039_v20  ;;  %2476 = vmatprep.mubr.msk.bf16.mxu1 %vm2664_vm0, %v2663_v1 }
  0xc9   : > { %v2982_v28 = vpop.permute.xlu1 %1133  ;;  %2480 = vmatprep.subr.bf16.mxu1 %v2663_v1 }
  0xca   : > { %v1138_v29 = vsel %vm1135_vm10, %v1132_v22, %v2982_v28 }
  0xcb   : > { %2352 = vmatmul.mubr.msk.bf16.vlgmr.msra.gmra.mxu0 %vm277_vm3, %v2350_v25  ;;  %v1149_v30 = vsel %vm281_vm2, %v1138_v29, 0 }
  0xcc   : > { %1166 = vmatpush1.bf16.msra.mxu0 %v1143_v27  ;;  %1183 = vmatprep.mubr.bf16.mxu0 %v2661_v0 }
  0xcf   : > { %2477 = vmatmul.mubr.msk.bf16.vlgmr.msra.gmra.mxu1 %vm277_vm3, %v2350_v25 }
  0xd0   : > { %2481 = vmatpush3.bf16.msra.mxu1 %v1149_v30  ;;  %2482 = vmatprep.mubr.msk.bf16.mxu1 %vm2664_vm0, %v2663_v1 }
  0xd1   : > { %2486 = vmatprep.subr.bf16.mxu1 %v2663_v1 }
  0xd3   : > { %2356 = vmatmul.mubr.msk.bf16.vlgmr.msra.gmra.mxu0 %vm277_vm3, %v2354_v31 }
  0xd4   : > { %1329 = vmatprep.mubr.bf16.mxu0 %v2661_v0 }
  0xd7   : > { %2483 = vmatmul.mubr.msk.bf16.vlgmr.msra.gmra.mxu1 %vm277_vm3, %v2354_v31 }
  0xd8   : > { %2488 = vmatprep.mubr.msk.bf16.mxu1 %vm2664_vm0, %v2663_v1 }
 0x153   : > { %v325_v32 = vpop.f32.mrf.mxu0 }
 0x155   : > { %v327_v33 = vpop.f32.mrf.mxu0 }
 0x157   : > { %v329_v34 = vpop.f32.mrf.mxu0  ;;  %v366_v35 = vpop.f32.mrf.mxu1 }
 0x159   : > { %v330_v37 = vpop.f32.mrf.mxu0  ;;  %v2436_v38 = vpop.f32.mrf.mxu1 }
 0x15b   : > { %v369_v39 = vpop.f32.mrf.mxu1  ;;  %v430_v40 = vpop.f32.mrf.mxu0 }
 0x15c   : > { %v431_v27 = vadd.f32 %v430_v40, %v325_v32  ;;  %v1249_v39 = vlaneseq }
 0x15d   : > { %v2437_v41 = vpop.f32.mrf.mxu1  ;;  %v432_v42 = vpop.f32.mrf.mxu0 }
 0x15e   : > { %v433_v31 = vadd.f32 %v432_v42, %v327_v33 }
 0x15f   : > { %v434_v43 = vpop.f32.mrf.mxu0  ;;  %v471_v44 = vpop.f32.mrf.mxu1 }
 0x160   : > { %v472_v41 = vadd.f32 %v471_v44, %v366_v35 }
 0x161   : > { %v435_v45 = vpop.f32.mrf.mxu0  ;;  %v2442_v46 = vpop.f32.mrf.mxu1 }
 0x163   : > { %v474_v47 = vpop.f32.mrf.mxu1  ;;  %v537_v48 = vpop.f32.mrf.mxu0 }
 0x164   : > { %v584_v34 = vadd.f32 %v537_v48, %v431_v27 }
 0x165   : > { %v2443_v49 = vpop.f32.mrf.mxu1  ;;  %v539_v50 = vpop.f32.mrf.mxu0 }
 0x166   : > { %v585_v43 = vadd.f32 %v539_v50, %v433_v31 }
 0x167   : > { %v541_v51 = vpop.f32.mrf.mxu0  ;;  %v578_v52 = vpop.f32.mrf.mxu1 }
 0x168   : > { %v586_v49 = vadd.f32 %v578_v52, %v472_v41  ;;  %v1247_v52 = vld [vmem:[%s3242_s1] sm:$0x7] }
 0x169   : > { %v542_v53 = vpop.f32.mrf.mxu0  ;;  %v2448_v54 = vpop.f32.mrf.mxu1 }
 0x16b   : > { %v581_v55 = vpop.f32.mrf.mxu1  ;;  %v647_v56 = vpop.f32.mrf.mxu0 }
 0x16c   : > { %v694_v45 = vadd.f32 %v647_v56, %v584_v34 }
 0x16d   : > { %v2449_v58 = vpop.f32.mrf.mxu1  ;;  %v649_v59 = vpop.f32.mrf.mxu0 }
 0x16e   : > { %v695_v51 = vadd.f32 %v649_v59, %v585_v43  ;;  %v1250_v58 = vshrl.u32 %v1249_v39, 7  ;;  %v1239_v59 = vpop.permute.xlu0 %1238 }
 0x16f   : > { %v651_v60 = vpop.f32.mrf.mxu0  ;;  %v688_v61 = vpop.f32.mrf.mxu1 }
 0x170   : > { %v696_v60 = vadd.f32 %v688_v61, %v586_v49  ;;  %v1251_v44 = vsub.s32 0, %v1250_v58 }
 0x171   : > { %v652_v62 = vpop.f32.mrf.mxu0  ;;  %v2454_v63 = vpop.f32.mrf.mxu1 }
 0x173   : > { %v691_v2 = vpop.f32.mrf.mxu1  ;;  %v745_v3 = vpop.f32.mrf.mxu0 }
 0x174   : > { %v792_v53 = vadd.f32 %v745_v3, %v694_v45 }
 0x175   : > { %v2455_v4 = vpop.f32.mrf.mxu1  ;;  %v747_v6 = vpop.f32.mrf.mxu0 }
 0x176   : > { %v793_v32 = vadd.f32 %v747_v6, %v695_v51  ;;  %v2220_v51 = vld [vmem:[%s3246_s5] sm:$0xff] }
 0x177   : > { %v749_v7 = vpop.f32.mrf.mxu0  ;;  %v786_v9 = vpop.f32.mrf.mxu1 }
 0x178   : > { %v794_v42 = vadd.f32 %v786_v9, %v696_v60 }
 0x179   : > { %v750_v10 = vpop.f32.mrf.mxu0  ;;  %v2460_v11 = vpop.f32.mrf.mxu1 }
 0x17a   : > { %v1255_v11 = vsub.s32 1, %v1250_v58 }
 0x17b   : > { %v789_v12 = vpop.f32.mrf.mxu1  ;;  %v855_v13 = vpop.f32.mrf.mxu0 }
 0x17c   : > { %v902_v40 = vadd.f32 %v855_v13, %v792_v53  ;;  %v1252_v12 = vrot.slane %v1247_v52, %v1251_v44 }
 0x17d   : > { %v2461_v14 = vpop.f32.mrf.mxu1  ;;  %v857_v15 = vpop.f32.mrf.mxu0 }
 0x17e   : > { %v903_v48 = vadd.f32 %v857_v15, %v793_v32 }
 0x17f   : > { %v859_v18 = vpop.f32.mrf.mxu0  ;;  %v896_v19 = vpop.f32.mrf.mxu1 }
 0x180   : > { %v904_v50 = vadd.f32 %v896_v19, %v794_v42  ;;  %v1259_v19 = vsub.s32 2, %v1250_v58 }
 0x181   : > { %v860_v20 = vpop.f32.mrf.mxu0  ;;  %v2466_v21 = vpop.f32.mrf.mxu1 }
 0x183   : > { %v899_v22 = vpop.f32.mrf.mxu1  ;;  %v965_v23 = vpop.f32.mrf.mxu0 }
 0x184   : > { %v1012_v63 = vadd.f32 %v965_v23, %v902_v40 }
 0x185   : > { %v2467_v24 = vpop.f32.mrf.mxu1  ;;  %v967_v25 = vpop.f32.mrf.mxu0 }
 0x186   : > { %v1013_v56 = vadd.f32 %v967_v25, %v903_v48  ;;  %v1256_v24 = vrot.slane %v1247_v52, %v1255_v11 }
 0x187   : > { %v969_v29 = vpop.f32.mrf.mxu0  ;;  %v1006_v30 = vpop.f32.mrf.mxu1 }
 0x188   : > { %v1014_v6 = vadd.f32 %v1006_v30, %v904_v50 }
 0x189   : > { %v970_v37 = vpop.f32.mrf.mxu0  ;;  %v2472_v38 = vpop.f32.mrf.mxu1 }
 0x18a   : > { %v1260_v37 = vrot.slane %v1247_v52, %v1259_v19 }
 0x18b   : > { %v1009_v46 = vpop.f32.mrf.mxu1  ;;  %v1075_v47 = vpop.f32.mrf.mxu0 }
 0x18c   : > { %v1122_v4 = vadd.f32 %v1075_v47, %v1012_v63 }
 0x18d   : > { %v2473_v54 = vpop.f32.mrf.mxu1  ;;  %v1077_v55 = vpop.f32.mrf.mxu0 }
 0x18e   : > { %v1123_v7 = vadd.f32 %v1077_v55, %v1013_v56  ;;  %v1270_v56 = vld [vmem:[%s3245_s4] sm:$0xf] }
 0x18f   : > { %v1079_v62 = vpop.f32.mrf.mxu0  ;;  %v1116_v33 = vpop.f32.mrf.mxu1 }
 0x190   : > { %v1124_v14 = vadd.f32 %v1116_v33, %v1014_v6  ;;  %v2358_v33 = vld [vmem:[%s3245_s4 + $0x4] sm:$0xf] }
 0x191   : > { %v1080_v2 = vpop.f32.mrf.mxu0  ;;  %v2478_v35 = vpop.f32.mrf.mxu1 }
 0x193   : > { %v1119_v3 = vpop.f32.mrf.mxu1  ;;  %v1185_v61 = vpop.f32.mrf.mxu0 }
 0x194   : > { %v1232_v10 = vadd.f32 %v1185_v61, %v1122_v4 }
 0x195   : > { %v2479_v9 = vpop.f32.mrf.mxu1  ;;  %v1187_v13 = vpop.f32.mrf.mxu0 }
 0x196   : > { %v1241_v15 = vadd.f32 %v1239_v59, %v1232_v10  ;;  %v1233_v18 = vadd.f32 %v1187_v13, %v1123_v7 }
 0x197   : > { %v1189_v20 = vpop.f32.mrf.mxu0  ;;  %v1226_v21 = vpop.f32.mrf.mxu1 }
 0x198   : > { %v1244_v22 = vmax.f32 %v1241_v15, 0.0  ;;  %v1242_v23 = vadd.f32 %v1239_v59, %v1233_v18  ;;  %v1234_v25 = vadd.f32 %v1226_v21, %v1124_v14  ;;  %v2369_v21 = vld [vmem:[%s3245_s4 + $0xc] sm:$0xf] }
 0x199   : > { %v1190_v27 = vpop.f32.mrf.mxu0  ;;  %v2484_v29 = vpop.f32.mrf.mxu1 }
 0x19a   : > { %v1264_v31 = vmul.f32 %v1252_v12, %v1244_v22  ;;  %v1245_v30 = vmax.f32 %v1242_v23, 0.0  ;;  %v1243_v34 = vadd.f32 %v1239_v59, %v1234_v25  ;;  %v2365_v12 = vld [vmem:[%s3245_s4 + $0x8] sm:$0xf] }
 0x19b   : > { %v1229_v38 = vpop.f32.mrf.mxu1 }
 0x19c   : > { %v3005_v39 = vpack.c.bf16 %v1264_v31, %v1264_v31  ;;  %v1265_v41 = vmul.f32 %v1256_v24, %v1245_v30  ;;  %v1246_v43 = vmax.f32 %v1243_v34, 0.0  ;;  %v2373_v34 = vld [vmem:[%s3245_s4 + $0x10] sm:$0xf] }
 0x19d   : > { %v2485_v45 = vpop.f32.mrf.mxu1 }
 0x19e   : > { %v1266_v46 = vmul.f32 %v1260_v37, %v1246_v43  ;;  %1276 = vrot.lane.b32.xlu1 %v3005_v39, %s2662_s9  ;;  %v3009_v47 = vpack.c.bf16 %v1265_v41, %v1265_v41  ;;  %v1700_v23 = vsel %vm281_vm2, %v3005_v39, 0 }
 0x1a0   : > { %v3011_v49 = vpack.c.bf16 %v1266_v46, %v1266_v46  ;;  %v2377_v46 = vld [vmem:[%s3245_s4 + $0x14] sm:$0xf] }
 0x1a2   : > { %1280 = vrot.lane.b32.xlu0 %v3011_v49, %s2662_s9  ;;  %1278 = vrot.lane.b32.xlu1 %v3009_v47, %s2662_s9  ;;  %v1706_v24 = vsel %vm281_vm2, %v3011_v49, 0  ;;  %s2672_s9 = smov [#allocation2]  }
 0x1a6   : > { %1380 = vrot.lane.b32.xlu0 %v3009_v47, %s2665_s15  ;;  %1378 = vrot.lane.b32.xlu1 %v3005_v39, %s2665_s15 }
 0x1aa   : > { %1482 = vrot.lane.b32.xlu0 %v3005_v39, %s2666_s16  ;;  %1382 = vrot.lane.b32.xlu1 %v3011_v49, %s2665_s15  ;;  %s2603_s15 = sshll.u32 %s2672_s9, 4  ;;  %s2604_s15 = int_to_ptr.vmem [resolvable:$false] %s2603_s15 }
 0x1ae   : > { %1486 = vrot.lane.b32.xlu0 %v3011_v49, %s2666_s16  ;;  %1484 = vrot.lane.b32.xlu1 %v3009_v47, %s2666_s16  ;;  %s2605_s16 = scalar_lea.vmem %s2604_s15, 768 }
 0x1b2   : > { %1591 = vrot.lane.b32.xlu0 %v3009_v47, %s2667_s17  ;;  %1589 = vrot.lane.b32.xlu1 %v3005_v39, %s2667_s17 }
 0x1b6   : > { %1794 = vrot.lane.b32.xlu0 %v3005_v39, %s2668_s18  ;;  %1593 = vrot.lane.b32.xlu1 %v3011_v49, %s2667_s17 }
 0x1ba   : > { %1798 = vrot.lane.b32.xlu0 %v3011_v49, %s2668_s18  ;;  %1796 = vrot.lane.b32.xlu1 %v3009_v47, %s2668_s18 }
 0x1be   : > { %1903 = vrot.lane.b32.xlu0 %v3009_v47, %s2669_s19  ;;  %1901 = vrot.lane.b32.xlu1 %v3005_v39, %s2669_s19 }
 0x1c2   : > { %2008 = vrot.lane.b32.xlu0 %v3005_v39, %s2670_s20  ;;  %1905 = vrot.lane.b32.xlu1 %v3011_v49, %s2669_s19 }
 0x1c6   : > { %2012 = vrot.lane.b32.xlu0 %v3011_v49, %s2670_s20  ;;  %2010 = vrot.lane.b32.xlu1 %v3009_v47, %s2670_s20  ;;  %s242_s20 = sand.u32 1, %s2651_s22  }
 0x1c7   : > { %s2242_s11 = scalar_lea.sflag [#allocation3], %s242_s20 }
 0x1ca   : > { %2117 = vrot.lane.b32.xlu0 %v3009_v47, %s2671_s26  ;;  %2115 = vrot.lane.b32.xlu1 %v3005_v39, %s2671_s26 }
 0x1ce   : > { %2223 = vperm.xlu0 %2593, %v2220_v51   ;;  %2119 = vrot.lane.b32.xlu1 %v3011_v49, %s2671_s26  ;;  %s2540_s26 = smul.u32 24, %s242_s20 }
 0x1d0   : > { %s244_s13 = scalar_lea.vmem [#allocation2], %s2540_s26 }
 0x1d1   : > { %s2256_s28 = sshll.u32 %s244_s13, 4  ;;  %s2257_s28 = int_to_ptr.vmem [resolvable:$true] %s2256_s28 }
 0x1d2   : > { %s2599_s25 = scalar_lea.vmem %s2257_s28, 384  ;;  %p2606_p0 = scmp.lt.s32.totalorder %s2257_s28, %s2604_s15 }
 0x1d3   : > { %p2600_p11 = scmp.ne.s32.totalorder %s2257_s28, %s2599_s25  ;;  %p2607_p1 = scmp.lt.s32.totalorder %s2605_s16, %s2599_s25 }
 0x1d5   : > { %p2601_p12 = pnand %p2600_p11, %p2746_p5  ;;  %p2608_p2 = por %p2607_p1, %p2606_p0 }
 0x1d7   : > { %p2602_p13 = pneg %p2601_p12 }
 0x1d9   : > { %p2609_p3 = pnand %p2608_p2, %p2602_p13 }
 0x210   : > { %v1277_v53 = vpop.permute.xlu1 %1276 }
 0x211   : > { %v1282_v54 = vsel %vm273_vm1, %v2843_v8, %v1277_v53 }
 0x212   : > { %v1289_v40 = vsel %vm281_vm2, %v1282_v54, 0 }
 0x214   : > { %v1281_v55 = vpop.permute.xlu0 %1280  ;;  %v1279_v58 = vpop.permute.xlu1 %1278 }
 0x215   : > { %v1283_v60 = vsel %vm273_vm1, %v1277_v53, %v1279_v58  ;;  %v1284_v32 = vsel %vm273_vm1, %v1279_v58, %v1281_v55  ;;  %v2381_v58 = vld [vmem:[%s3245_s4 + $0x18] sm:$0xf] }
 0x216   : > { %v1295_v62 = vsel %vm281_vm2, %v1284_v32, 0  ;;  %2359 = vmatprep.subr.msk.bf16.mxu0 %vm281_vm2, %v1283_v60 }
 0x217   : > { %1312 = vmatpush1.bf16.msra.mxu0 %v1289_v40  ;;  %2487 = vmatpush3.bf16.msra.mxu1 %v1295_v62 }
 0x218   : > { %v1381_v42 = vpop.permute.xlu0 %1380  ;;  %v1379_v8 = vpop.permute.xlu1 %1378  ;;  %2492 = vmatprep.subr.bf16.mxu1 %v2663_v1 }
 0x219   : > { %v1384_v48 = vsel %vm380_vm4, %v2853_v16, %v1379_v8  ;;  %v1385_v63 = vsel %vm380_vm4, %v1379_v8, %v1381_v42  ;;  %v2385_v8 = vld [vmem:[%s3245_s4 + $0x1c] sm:$0xf] }
 0x21a   : > { %v1391_v2 = vsel %vm281_vm2, %v1384_v48, 0  ;;  %2360 = vmatmul.mubr.msk.bf16.vlgmr.msra.gmra.mxu0 %vm277_vm3, %v2358_v33  ;;  %2489 = vmatmul.mubr.msk.bf16.vlgmr.msra.gmra.mxu1 %vm277_vm3, %v2358_v33 }
 0x21b   : > { %2362 = vmatprep.subr.msk.bf16.mxu0 %vm281_vm2, %v1385_v63  ;;  %1431 = vmatprep.mubr.bf16.mxu0 %v2661_v0 }
 0x21c   : > { %1414 = vmatpush1.bf16.msra.mxu0 %v1391_v2  ;;  %v1483_v35 = vpop.permute.xlu0 %1482  ;;  %v1383_v44 = vpop.permute.xlu1 %1382  ;;  %2494 = vmatprep.mubr.msk.bf16.mxu1 %vm2664_vm0, %v2663_v1 }
 0x21d   : > { %v1386_v16 = vsel %vm380_vm4, %v1381_v42, %v1383_v44  ;;  %v1488_v4 = vsel %vm487_vm5, %v2871_v26, %v1483_v35 }
 0x21e   : > { %v1397_v50 = vsel %vm281_vm2, %v1386_v16, 0  ;;  %v1495_v7 = vsel %vm281_vm2, %v1488_v4, 0 }
 0x21f   : > { %2493 = vmatpush3.bf16.msra.mxu1 %v1397_v50 }
 0x220   : > { %v1487_v52 = vpop.permute.xlu0 %1486  ;;  %v1485_v59 = vpop.permute.xlu1 %1484  ;;  %2498 = vmatprep.subr.bf16.mxu1 %v2663_v1 }
 0x221   : > { %v1489_v3 = vsel %vm487_vm5, %v1483_v35, %v1485_v59  ;;  %v1490_v61 = vsel %vm487_vm5, %v1485_v59, %v1487_v52 }
 0x222   : > { %v1501_v6 = vsel %vm281_vm2, %v1490_v61, 0  ;;  %2363 = vmatmul.mubr.msk.bf16.vlgmr.msra.gmra.mxu0 %vm277_vm3, %v1270_v56  ;;  %2495 = vmatmul.mubr.msk.bf16.vlgmr.msra.gmra.mxu1 %vm277_vm3, %v1270_v56 }
 0x223   : > { %2366 = vmatprep.subr.msk.bf16.mxu0 %vm281_vm2, %v1489_v3  ;;  %2499 = vmatpush3.bf16.msra.mxu1 %v1501_v6 }
 0x224   : > { %1518 = vmatpush1.bf16.msra.mxu0 %v1495_v7  ;;  %v1592_v26 = vpop.permute.xlu0 %1591  ;;  %v1590_v10 = vpop.permute.xlu1 %1589  ;;  %1535 = vmatprep.mubr.bf16.mxu0 %v2661_v0 }
 0x225   : > { %v1596_v11 = vsel %vm597_vm6, %v1590_v10, %v1592_v26  ;;  %2500 = vmatprep.mubr.msk.bf16.mxu1 %vm2664_vm0, %v2663_v1  ;;  %2504 = vmatprep.subr.bf16.mxu1 %v2663_v1  ;;  %v1595_v9 = vsel %vm597_vm6, %v2889_v36, %v1590_v10 }
 0x226   : > { %2370 = vmatprep.subr.msk.bf16.mxu0 %vm281_vm2, %v1596_v11  ;;  %v1602_v18 = vsel %vm281_vm2, %v1595_v9, 0 }
 0x228   : > { %v1795_v13 = vpop.permute.xlu0 %1794  ;;  %v1594_v14 = vpop.permute.xlu1 %1593 }
 0x229   : > { %v1597_v15 = vsel %vm597_vm6, %v1592_v26, %v1594_v14 }
 0x22a   : > { %v1608_v19 = vsel %vm281_vm2, %v1597_v15, 0  ;;  %2367 = vmatmul.mubr.msk.bf16.vlgmr.msra.gmra.mxu0 %vm277_vm3, %v2365_v12  ;;  %2501 = vmatmul.mubr.msk.bf16.vlgmr.msra.gmra.mxu1 %vm277_vm3, %v2365_v12 }
 0x22b   : > { %1625 = vmatpush1.bf16.msra.mxu0 %v1602_v18  ;;  %2505 = vmatpush3.bf16.msra.mxu1 %v1608_v19 }
 0x22c   : > { %2374 = vmatprep.subr.msk.bf16.mxu0 %vm281_vm2, %v3009_v47  ;;  %v1797_v36 = vpop.permute.xlu1 %1796  ;;  %1642 = vmatprep.mubr.bf16.mxu0 %v2661_v0  ;;  %v1799_v20 = vpop.permute.xlu0 %1798 }
 0x22d   : > { %2506 = vmatprep.mubr.msk.bf16.mxu1 %vm2664_vm0, %v2663_v1  ;;  %2510 = vmatprep.subr.bf16.mxu1 %v2663_v1  ;;  %v1801_v25 = vsel %vm805_vm7, %v1797_v36, %v1799_v20  ;;  %v1802_v31 = vsel %vm805_vm7, %v1799_v20, %v2928_v57  ;;  %v1800_v30 = vsel %vm805_vm7, %v1795_v13, %v1797_v36 }
 0x22e   : > { %v1813_v37 = vsel %vm281_vm2, %v1802_v31, 0  ;;  %v1807_v38 = vsel %vm281_vm2, %v1800_v30, 0 }
 0x230   : > { %v1902_v22 = vpop.permute.xlu1 %1901  ;;  %v1904_v27 = vpop.permute.xlu0 %1903 }
 0x231   : > { %v1907_v43 = vsel %vm915_vm8, %v1902_v22, %v1904_v27 }
 0x232   : > { %2371 = vmatmul.mubr.msk.bf16.vlgmr.msra.gmra.mxu0 %vm277_vm3, %v2369_v21  ;;  %2507 = vmatmul.mubr.msk.bf16.vlgmr.msra.gmra.mxu1 %vm277_vm3, %v2369_v21  ;;  %v1914_v49 = vsel %vm281_vm2, %v1907_v43, 0 }
 0x233   : > { %1723 = vmatpush1.bf16.msra.mxu0 %v1700_v23  ;;  %2511 = vmatpush3.bf16.msra.mxu1 %v1706_v24 }
 0x234   : > { %2378 = vmatprep.subr.msk.bf16.mxu0 %vm281_vm2, %v1801_v25  ;;  %1740 = vmatprep.mubr.bf16.mxu0 %v2661_v0  ;;  %v1906_v29 = vpop.permute.xlu1 %1905  ;;  %v2009_v39 = vpop.permute.xlu0 %2008 }
 0x235   : > { %2512 = vmatprep.mubr.msk.bf16.mxu1 %vm2664_vm0, %v2663_v1  ;;  %2516 = vmatprep.subr.bf16.mxu1 %v2663_v1  ;;  %v1908_v41 = vsel %vm915_vm8, %v1904_v27, %v1906_v29  ;;  %v1909_v45 = vsel %vm915_vm8, %v1906_v29, %v2946_v5 }
 0x236   : > { %v1920_v51 = vsel %vm281_vm2, %v1909_v45, 0 }
 0x238   : > { %v2011_v57 = vpop.permute.xlu1 %2010  ;;  %v2013_v47 = vpop.permute.xlu0 %2012 }
 0x239   : > { %v2015_v54 = vsel %vm1025_vm9, %v2011_v57, %v2013_v47  ;;  %v2016_v5 = vsel %vm1025_vm9, %v2013_v47, %v2964_v17  ;;  %v2014_v55 = vsel %vm1025_vm9, %v2009_v39, %v2011_v57 }
 0x23a   : > { %2375 = vmatmul.mubr.msk.bf16.vlgmr.msra.gmra.mxu0 %vm277_vm3, %v2373_v34  ;;  %2513 = vmatmul.mubr.msk.bf16.vlgmr.msra.gmra.mxu1 %vm277_vm3, %v2373_v34  ;;  %v2027_v32 = vsel %vm281_vm2, %v2016_v5, 0  ;;  %v2021_v40 = vsel %vm281_vm2, %v2014_v55, 0 }
 0x23b   : > { %1830 = vmatpush1.bf16.msra.mxu0 %v1807_v38  ;;  %2517 = vmatpush3.bf16.msra.mxu1 %v1813_v37 }
 0x23c   : > { %2382 = vmatprep.subr.msk.bf16.mxu0 %vm281_vm2, %v1908_v41  ;;  %1847 = vmatprep.mubr.bf16.mxu0 %v2661_v0  ;;  %v2116_v53 = vpop.permute.xlu1 %2115  ;;  %v2118_v62 = vpop.permute.xlu0 %2117 }
 0x23d   : > { %2518 = vmatprep.mubr.msk.bf16.mxu1 %vm2664_vm0, %v2663_v1  ;;  %2522 = vmatprep.subr.bf16.mxu1 %v2663_v1  ;;  %v2121_v17 = vsel %vm1135_vm10, %v2116_v53, %v2118_v62 }
 0x23e   : > { %v2128_v48 = vsel %vm281_vm2, %v2121_v17, 0 }
 0x240   : > { %v2120_v60 = vpop.permute.xlu1 %2119 }
 0x241   : > { %v2122_v33 = vsel %vm1135_vm10, %v2118_v62, %v2120_v60  ;;  %v2123_v42 = vsel %vm1135_vm10, %v2120_v60, %v2982_v28  ;;  %v2389_v28 = vld [vmem:[%s3245_s4 + $0x20] sm:$0xf] }
 0x242   : > { %2379 = vmatmul.mubr.msk.bf16.vlgmr.msra.gmra.mxu0 %vm277_vm3, %v2377_v46  ;;  %2519 = vmatmul.mubr.msk.bf16.vlgmr.msra.gmra.mxu1 %vm277_vm3, %v2377_v46  ;;  %v2134_v63 = vsel %vm281_vm2, %v2123_v42, 0 }
 0x243   : > { %1937 = vmatpush1.bf16.msra.mxu0 %v1914_v49  ;;  %2523 = vmatpush3.bf16.msra.mxu1 %v1920_v51 }
 0x244   : > { %2386 = vmatprep.subr.msk.bf16.mxu0 %vm281_vm2, %v2015_v54  ;;  %1954 = vmatprep.mubr.bf16.mxu0 %v2661_v0 }
 0x245   : > { %2524 = vmatprep.mubr.msk.bf16.mxu1 %vm2664_vm0, %v2663_v1  ;;  %2528 = vmatprep.subr.bf16.mxu1 %v2663_v1 }
 0x24a   : > { %2383 = vmatmul.mubr.msk.bf16.vlgmr.msra.gmra.mxu0 %vm277_vm3, %v2381_v58  ;;  %2525 = vmatmul.mubr.msk.bf16.vlgmr.msra.gmra.mxu1 %vm277_vm3, %v2381_v58 }
 0x24b   : > { %2044 = vmatpush1.bf16.msra.mxu0 %v2021_v40  ;;  %2529 = vmatpush3.bf16.msra.mxu1 %v2027_v32 }
 0x24c   : > { %2390 = vmatprep.subr.msk.bf16.mxu0 %vm281_vm2, %v2122_v33  ;;  %2061 = vmatprep.mubr.bf16.mxu0 %v2661_v0 }
 0x24d   : > { %2530 = vmatprep.mubr.msk.bf16.mxu1 %vm2664_vm0, %v2663_v1  ;;  %2534 = vmatprep.subr.bf16.mxu1 %v2663_v1 }
 0x252   : > { %2387 = vmatmul.mubr.msk.bf16.vlgmr.msra.gmra.mxu0 %vm277_vm3, %v2385_v8  ;;  %2531 = vmatmul.mubr.msk.bf16.vlgmr.msra.gmra.mxu1 %vm277_vm3, %v2385_v8 }
 0x253   : > { %2151 = vmatpush1.bf16.msra.mxu0 %v2128_v48  ;;  %2535 = vmatpush3.bf16.msra.mxu1 %v2134_v63 }
 0x254   : > { %2168 = vmatprep.mubr.bf16.mxu0 %v2661_v0  ;;  %2536 = vmatprep.mubr.msk.bf16.mxu1 %vm2664_vm0, %v2663_v1 }
 0x25a   : > { %2391 = vmatmul.mubr.msk.bf16.vlgmr.msra.gmra.mxu0 %vm277_vm3, %v2389_v28  ;;  %2537 = vmatmul.mubr.msk.bf16.vlgmr.msra.gmra.mxu1 %vm277_vm3, %v2389_v28 }
 0x2da   : > { %v1331_v2 = vpop.f32.mrf.mxu0  ;;  %v1372_v35 = vpop.f32.mrf.mxu1 }
 0x2dc   : > { %v1333_v44 = vpop.f32.mrf.mxu0  ;;  %v2490_v16 = vpop.f32.mrf.mxu1 }
 0x2de   : > { %v1335_v50 = vpop.f32.mrf.mxu0  ;;  %v1375_v56 = vpop.f32.mrf.mxu1 }
 0x2e0   : > { %v1336_v4 = vpop.f32.mrf.mxu0  ;;  %v2491_v52 = vpop.f32.mrf.mxu1 }
 0x2e2   : > { %v1433_v0 = vpop.f32.mrf.mxu0  ;;  %v1474_v59 = vpop.f32.mrf.mxu1 }
 0x2e3   : > { %v1434_v58 = vadd.f32 %v1433_v0, %v1331_v2  ;;  %v1475_v60 = vadd.f32 %v1474_v59, %v1372_v35 }
 0x2e4   : > { %v1435_v3 = vpop.f32.mrf.mxu0  ;;  %v2496_v1 = vpop.f32.mrf.mxu1 }
 0x2e5   : > { %v1436_v62 = vadd.f32 %v1435_v3, %v1333_v44 }
 0x2e6   : > { %v1437_v61 = vpop.f32.mrf.mxu0  ;;  %v1477_v6 = vpop.f32.mrf.mxu1 }
 0x2e8   : > { %v1438_v7 = vpop.f32.mrf.mxu0  ;;  %v2497_v26 = vpop.f32.mrf.mxu1 }
 0x2ea   : > { %v1537_v10 = vpop.f32.mrf.mxu0  ;;  %v1578_v11 = vpop.f32.mrf.mxu1 }
 0x2eb   : > { %v1584_v33 = vadd.f32 %v1537_v10, %v1434_v58  ;;  %v1586_v17 = vadd.f32 %v1578_v11, %v1475_v60 }
 0x2ec   : > { %v1539_v9 = vpop.f32.mrf.mxu0  ;;  %v2502_v12 = vpop.f32.mrf.mxu1 }
 0x2ed   : > { %v1585_v48 = vadd.f32 %v1539_v9, %v1436_v62 }
 0x2ee   : > { %v1541_v13 = vpop.f32.mrf.mxu0  ;;  %v1581_v14 = vpop.f32.mrf.mxu1 }
 0x2ef   : > { %v2597_v14 = vld [vmem:[%s2768_s14] sm:$0xff] }
 0x2f0   : > { %v1542_v15 = vpop.f32.mrf.mxu0  ;;  %v2503_v18 = vpop.f32.mrf.mxu1 }
 0x2f1   : > { %v2229_v15 = vunpack.c.l.bf16 %v2597_v14 }
 0x2f2   : > { %v1644_v19 = vpop.f32.mrf.mxu0  ;;  %v1685_v36 = vpop.f32.mrf.mxu1 }
 0x2f3   : > { %v1691_v63 = vadd.f32 %v1644_v19, %v1584_v33  ;;  %v1693_v28 = vadd.f32 %v1685_v36, %v1586_v17  ;;  %v2224_v19 = vpop.permute.xlu0 %2223 }
 0x2f4   : > { %v1646_v20 = vpop.f32.mrf.mxu0  ;;  %v2508_v21 = vpop.f32.mrf.mxu1 }
 0x2f5   : > { %v1692_v56 = vadd.f32 %v1646_v20, %v1585_v48 }
 0x2f6   : > { %v1648_v22 = vpop.f32.mrf.mxu0  ;;  %v1688_v23 = vpop.f32.mrf.mxu1 }
 0x2f7   : > { %v2598_v22 = vld [vmem:[%s2768_s14 + $0x8] sm:$0xf] }
 0x2f8   : > { %v1649_v24 = vpop.f32.mrf.mxu0  ;;  %v2509_v25 = vpop.f32.mrf.mxu1  ;;  %v2231_v23 = vunpack.c.l.bf16 %v2598_v22 }
 0x2fa   : > { %v1742_v27 = vpop.f32.mrf.mxu0  ;;  %v1783_v29 = vpop.f32.mrf.mxu1 }
 0x2fb   : > { %v1789_v4 = vadd.f32 %v1742_v27, %v1691_v63  ;;  %v1791_v52 = vadd.f32 %v1783_v29, %v1693_v28 }
 0x2fc   : > { %v1744_v31 = vpop.f32.mrf.mxu0  ;;  %v2514_v30 = vpop.f32.mrf.mxu1 }
 0x2fd   : > { %v1790_v35 = vadd.f32 %v1744_v31, %v1692_v56  ;;  %v2230_v30 = vunpack.c.h.bf16 %v2597_v14 }
 0x2fe   : > { %v1746_v34 = vpop.f32.mrf.mxu0  ;;  %v1786_v37 = vpop.f32.mrf.mxu1 }
 0x300   : > { %v1747_v38 = vpop.f32.mrf.mxu0  ;;  %v2515_v39 = vpop.f32.mrf.mxu1 }
 0x302   : > { %v1849_v41 = vpop.f32.mrf.mxu0  ;;  %v1890_v57 = vpop.f32.mrf.mxu1 }
 0x303   : > { %v1896_v0 = vadd.f32 %v1849_v41, %v1789_v4  ;;  %v1898_v44 = vadd.f32 %v1890_v57, %v1791_v52 }
 0x304   : > { %v1851_v43 = vpop.f32.mrf.mxu0  ;;  %v2520_v45 = vpop.f32.mrf.mxu1 }
 0x305   : > { %v1897_v61 = vadd.f32 %v1851_v43, %v1790_v35 }
 0x306   : > { %v1853_v46 = vpop.f32.mrf.mxu0  ;;  %v1893_v47 = vpop.f32.mrf.mxu1 }
 0x308   : > { %v1854_v49 = vpop.f32.mrf.mxu0  ;;  %v2521_v51 = vpop.f32.mrf.mxu1 }
 0x30a   : > { %v1956_v53 = vpop.f32.mrf.mxu0  ;;  %v1997_v54 = vpop.f32.mrf.mxu1 }
 0x30b   : > { %v2003_v6 = vadd.f32 %v1956_v53, %v1896_v0  ;;  %v2005_v7 = vadd.f32 %v1997_v54, %v1898_v44 }
 0x30c   : > { %v1958_v5 = vpop.f32.mrf.mxu0  ;;  %v2526_v55 = vpop.f32.mrf.mxu1 }
 0x30d   : > { %v2004_v11 = vadd.f32 %v1958_v5, %v1897_v61 }
 0x30e   : > { %v1960_v32 = vpop.f32.mrf.mxu0  ;;  %v2000_v40 = vpop.f32.mrf.mxu1 }
 0x310   : > { %v1961_v42 = vpop.f32.mrf.mxu0  ;;  %v2527_v8 = vpop.f32.mrf.mxu1 }
 0x312   : > { %v2063_v16 = vpop.f32.mrf.mxu0  ;;  %v2104_v50 = vpop.f32.mrf.mxu1 }
 0x313   : > { %v2110_v9 = vadd.f32 %v2063_v16, %v2003_v6  ;;  %v2112_v12 = vadd.f32 %v2104_v50, %v2005_v7 }
 0x314   : > { %v2065_v1 = vpop.f32.mrf.mxu0  ;;  %v2532_v2 = vpop.f32.mrf.mxu1 }
 0x315   : > { %v2111_v36 = vadd.f32 %v2065_v1, %v2004_v11 }
 0x316   : > { %v2067_v59 = vpop.f32.mrf.mxu0  ;;  %v2107_v3 = vpop.f32.mrf.mxu1 }
 0x318   : > { %v2068_v26 = vpop.f32.mrf.mxu0  ;;  %v2533_v10 = vpop.f32.mrf.mxu1 }
 0x31a   : > { %v2170_v13 = vpop.f32.mrf.mxu0  ;;  %v2211_v18 = vpop.f32.mrf.mxu1 }
 0x31b   : > { %v2217_v20 = vadd.f32 %v2170_v13, %v2110_v9  ;;  %v2219_v21 = vadd.f32 %v2211_v18, %v2112_v12 }
 0x31c   : > { %v2172_v24 = vpop.f32.mrf.mxu0  ;;  %v2538_v25 = vpop.f32.mrf.mxu1 }
 0x31d   : > { %v2226_v27 = vadd.f32 %v2224_v19, %v2217_v20  ;;  %v2228_v29 = vadd.f32 %v2224_v19, %v2219_v21  ;;  %v2218_v31 = vadd.f32 %v2172_v24, %v2111_v36 }
 0x31e   : > { %v2174_v34 = vpop.f32.mrf.mxu0  ;;  %v2214_v37 = vpop.f32.mrf.mxu1 }
 0x31f   : > { %v2232_v38 = vadd.f32 %v2229_v15, %v2226_v27  ;;  %v2234_v39 = vadd.f32 %v2231_v23, %v2228_v29  ;;  %v2227_v41 = vadd.f32 %v2224_v19, %v2218_v31 }
 0x320   : > { %v2175_v57 = vpop.f32.mrf.mxu0  ;;  %v2539_v43 = vpop.f32.mrf.mxu1 }
 0x321   : > { %v2235_v45 = vmax.f32 %v2232_v38, 0.0  ;;  %v2237_v46 = vmax.f32 %v2234_v39, 0.0  ;;  %v2233_v47 = vadd.f32 %v2230_v30, %v2227_v41 }
 0x323   : > { %2238 = vst [vmem:[%s244_s13] sm:$0xff] %v2235_v45  ;;  %2240 = vst [vmem:[%s244_s13 + $0x10] sm:$0xff] %v2237_v46  ;;  %v2236_v49 = vmax.f32 %v2233_v47, 0.0 }
 0x325   : > { %2239 = vst [vmem:[%s244_s13 + $0x8] sm:$0xff] %v2236_v49 }
 0x326   : > { %2612 = shalt.err (!%p2609_p3)
}
 0x327   : > { %s2613_s17 = scalar_lea.hbm %s2254_s10, 384  ;;  %s2617_s20 = scalar_lea.hbm %s3247_s6, 768 }
 0x328   : > { %p2614_p4 = scmp.ne.s32.totalorder %s2254_s10, %s2613_s17  ;;  %p2618_p9 = scmp.lt.s32.totalorder %s2254_s10, %s3247_s6 }
 0x329   : > { %p2619_p10 = scmp.lt.s32.totalorder %s2617_s20, %s2613_s17 }
 0x32a   : > { %p2615_p7 = pnand %p2614_p4, %p2746_p5 }
 0x32b   : > { %p2620_p11 = por %p2619_p10, %p2618_p9 }
 0x32c   : > { %p2616_p8 = pneg %p2615_p7 }
 0x32e   : > { %p2621_p12 = pnand %p2620_p11, %p2616_p8 }
 0x330   : > { %2624 = shalt.err (!%p2621_p12)
}
 0x331   : > { %2543 = dma.vmem_to_hbm [thread:$0]  (%p2746_p5), %s2257_s28, 384, %s2254_s10, %s2242_s11  }
 0x332 PF: > { %p2549_p13 = scmp.ge.s32.totalorder %s2659_s24, 2  ;;  %s2268_s13 = sand.u32 1, %s2647_s21  }
 0x333   : > { %s2269_s14 = scalar_lea.sflag [#allocation3], %s2268_s13 }
 0x334   : > { %p2546_p0 = pnand %p2549_p13, %p2750_p6 }
 0x336   : > { %p2547_p1 = pneg %p2546_p0 }
 0x338   : > { %2642 = dma.done.wait (%p2547_p1), %s2269_s14, 384  }
 0x339   : > { %2644 = vsyncadd (%p2547_p1), %s2269_s14, 4294966912  ;;  %p16_p2 = scmp.ge.s32.totalorder %s2733_s27, 4   ;;  %s3250_s21 = smov %s2651_s22 }
 0x33a   : > { %s3251_s22 = smov %s2655_s23  ;;  %s3252_s23 = smov %s2744_s30 }
 0x33b   : > { %s3253_s24 = smov %s2733_s27  ;;  %18 = sbr.rel (!%p16_p2) target bundleno = 3 (0x3), region = 95 }
 0x340   :  { %2274 = vsyncpa [#allocation3], 1 }
 0x341   :  { %2276 = vsyncpa [#allocation3 + $0x1], 1 }

</bundles_post_ra>
